<compile_context>
chip_gen: v7x
topology: tpu7x:2x2x1
jax: 0.10.0
libtpu: 0.0.40
codegen_flags: <defaults>
</compile_context>

<pallas_src>
import functools

import jax
import jax.numpy as jnp
from jax import lax
from jax.experimental import pallas as pl
from jax.experimental.pallas import tpu as pltpu

INPUT = 64
HIDDEN = 256
FC1 = 64
FC2 = 8
PACK = 128          # lane-dense packed output width: [o2 (64) | o3 padded (64)]


# --------------------------------------------------------------------------
# Fused kernel: tt-step RNN recurrence + fc1/tanh/fc2 head per grid step.
# --------------------------------------------------------------------------
def _rnn_fused_kernel(h0_ref, x_ref, whh_ref, wih_ref, w1_ref, b1_ref,
                      w2_ref, b2_ref, out_ref, hlast_ref,
                      xproj_scr, hstate_scr, *, tt, b_pad, unroll):
    g = pl.program_id(0)

    # --- Hoisted input projection for the whole slab (off the serial chain):
    #     (tt*b_pad, 64) @ (64, 256), bf16 operands, f32 accumulation.
    xproj_scr[...] = jnp.dot(
        x_ref[...].astype(jnp.bfloat16), wih_ref[...],
        preferred_element_type=jnp.float32)

    # --- Hidden-state carry across grid steps lives in the VMEM-resident
    #     `h_last` output block (constant block index). Seed it from h0 once.
    @pl.when(g == 0)
    def _():
        hlast_ref[...] = h0_ref[...]

    def step(i, h):
        r = pl.multiple_of(i * b_pad, b_pad)          # sublane-aligned row base
        h_new = jnp.tanh(
            jnp.dot(h.astype(jnp.bfloat16), whh_ref[...],
                    preferred_element_type=jnp.float32)
            + xproj_scr[pl.ds(r, b_pad), :])
        hstate_scr[pl.ds(r, b_pad), :] = h_new        # side store (off chain)
        return h_new                                  # carry in vregs

    h_final = lax.fori_loop(0, tt, step, hlast_ref[...], unroll=unroll)
    hlast_ref[...] = h_final

    # --- FC head over the slab's tt*b_pad rows (one batched MXU pass each).
    #     Dropout(p=0.2) is identity in eval mode.
    h_flat = hstate_scr[...].astype(jnp.bfloat16)                 # (rows, 256)
    o2 = jnp.tanh(
        jnp.dot(h_flat, w1_ref[...], preferred_element_type=jnp.float32)
        + b1_ref[...])                                            # (rows, 64)
    o3p = (jnp.dot(o2.astype(jnp.bfloat16), w2_ref[...],
                   preferred_element_type=jnp.float32)
           + b2_ref[...])                                         # (rows, 64)
    # Lane-dense packed store: [o2 | o3 (zero-padded to 64 lanes)].
    out_ref[...] = jnp.concatenate([o2, o3p], axis=-1)            # (rows, 128)


# --------------------------------------------------------------------------
# Host wrapper
# --------------------------------------------------------------------------
def rnn_arch_2_1_forward(x, hc, params, *, tt=None):
    """x: (T, B, 64) f32, hc: (1, B, 256) f32.  Returns (out3, hc, out2)."""
    T, B, _ = x.shape
    whh_t, wih_t, w1_t, b1, w2p_t, b2p = params

    # Pad batch to the f32 sublane tile (8): keeps every store unmasked.
    b_pad = max(8, ((B + 7) // 8) * 8)
    if b_pad != B:
        x = jnp.pad(x, ((0, 0), (0, b_pad - B), (0, 0)))
        hc = jnp.pad(hc, ((0, 0), (0, b_pad - B), (0, 0)))

    # Timesteps per grid step: largest divisor of T up to 128.
    if tt is None:
        tt = 1
        for cand in range(min(T, 128), 0, -1):
            if T % cand == 0:
                tt = cand
                break
    unroll = True if tt <= 32 else 8
    rows = tt * b_pad

    x2d = x.reshape(T * b_pad, INPUT)       # contiguous reshape (free in XLA)
    h0 = hc[0]                              # (b_pad, 256)

    packed, h_last = pl.pallas_call(
        functools.partial(_rnn_fused_kernel, tt=tt, b_pad=b_pad, unroll=unroll),
        out_shape=(
            jax.ShapeDtypeStruct((T * b_pad, PACK), jnp.float32),   # [o2|o3]
            jax.ShapeDtypeStruct((b_pad, HIDDEN), jnp.float32),     # h_T
        ),
        grid_spec=pltpu.PrefetchScalarGridSpec(
            num_scalar_prefetch=0,
            grid=(T // tt,),
            in_specs=[
                pl.BlockSpec((b_pad, HIDDEN), lambda g: (0, 0)),    # h0
                pl.BlockSpec((rows, INPUT), lambda g: (g, 0)),      # x slab
                pl.BlockSpec((HIDDEN, HIDDEN), lambda g: (0, 0)),   # W_hh^T bf16
                pl.BlockSpec((INPUT, HIDDEN), lambda g: (0, 0)),    # W_ih^T bf16
                pl.BlockSpec((HIDDEN, FC1), lambda g: (0, 0)),      # W1^T bf16
                pl.BlockSpec((1, FC1), lambda g: (0, 0)),           # b1 f32
                pl.BlockSpec((FC1, FC1), lambda g: (0, 0)),         # W2^T padded
                pl.BlockSpec((1, FC1), lambda g: (0, 0)),           # b2 padded
            ],
            out_specs=[
                pl.BlockSpec((rows, PACK), lambda g: (g, 0)),       # packed out
                pl.BlockSpec((b_pad, HIDDEN), lambda g: (0, 0)),    # h carry/out
            ],
            scratch_shapes=[
                pltpu.VMEM((rows, HIDDEN), jnp.float32),   # xproj slab
                pltpu.VMEM((rows, HIDDEN), jnp.float32),   # hidden-state slab
            ],
        ),
        compiler_params=pltpu.CompilerParams(
            dimension_semantics=("arbitrary",),   # time axis is sequential
        ),
    )(h0, x2d, whh_t, wih_t, w1_t, b1, w2p_t, b2p)

    # Un-pad and match PyTorch's out.view(-1, 256) row ordering (t, b).
    packed = packed.reshape(T, b_pad, PACK)
    out2 = packed[:, :B, :FC1].reshape(T * B, FC1)
    out3 = packed[:, :B, FC1:FC1 + FC2].reshape(T * B, FC2)
    hc_out = h_last[None, :B, :]
    return out3, hc_out, out2


def pytorch_to_kernel_params(w_ih, w_hh, w1, b1, w2, b2):
    """PyTorch-shaped weights -> kernel layout.

    w_ih: (256, 64), w_hh: (256, 256), w1: (64, 256), b1: (64,),
    w2: (8, 64), b2: (8,).
    MXU operands are bf16 (f32 accumulation in-kernel); biases stay f32.
    fc2 weight/bias are zero-padded to 64 output lanes so the kernel can emit
    one lane-dense 128-wide packed output block.
    """
    w2p_t = jnp.zeros((FC1, FC1), jnp.float32).at[:, :FC2].set(w2.T)
    b2p = jnp.zeros((FC1,), jnp.float32).at[:FC2].set(b2)
    return (
        w_hh.T.astype(jnp.bfloat16),       # (256, 256)
        w_ih.T.astype(jnp.bfloat16),       # (64, 256)
        w1.T.astype(jnp.bfloat16),         # (256, 64)
        b1.reshape(1, FC1).astype(jnp.float32),
        w2p_t.astype(jnp.bfloat16),        # (64, 64), cols 8.. are zero
        b2p.reshape(1, FC1).astype(jnp.float32),
    )


def _reference(x, hc, w_ih, w_hh, w1, b1, w2, b2):
    """Pure-JAX f32 reference matching the PyTorch module (eval mode)."""
    hp = lax.Precision.HIGHEST

    def step(h, x_t):
        h_new = jnp.tanh(jnp.dot(x_t, w_ih.T, precision=hp)
                         + jnp.dot(h, w_hh.T, precision=hp))
        return h_new, h_new

    h_last, hs = lax.scan(step, hc[0], x)
    r = hs.reshape(-1, HIDDEN)
    # TODO(synk): nn.Dropout(p=0.2) is identity in eval mode; modeled as identity.
    o2 = jnp.tanh(jnp.dot(r, w1.T, precision=hp) + b1)
    o3 = jnp.dot(o2, w2.T, precision=hp) + b2
    return o3, h_last[None], o2


if __name__ == "__main__":
    key = jax.random.PRNGKey(0)
    k_x, k_h, k0, k1, k2, k3, k4, k5 = jax.random.split(key, 8)

    T, B = 8, 2
    x = jax.random.normal(k_x, (T, B, INPUT), jnp.float32)
    hc = jax.random.normal(k_h, (1, B, HIDDEN), jnp.float32)

    # PyTorch-shaped parameters (deterministic). nn.RNN has bias=False.
    w_ih = jax.random.normal(k0, (HIDDEN, INPUT), jnp.float32) * 0.05
    w_hh = jax.random.normal(k1, (HIDDEN, HIDDEN), jnp.float32) * 0.05
    w1 = jax.random.normal(k2, (FC1, HIDDEN), jnp.float32) * 0.05
    b1 = jax.random.normal(k3, (FC1,), jnp.float32) * 0.05
    w2 = jax.random.normal(k4, (FC2, FC1), jnp.float32) * 0.05
    b2 = jax.random.normal(k5, (FC2,), jnp.float32) * 0.05

    params = pytorch_to_kernel_params(w_ih, w_hh, w1, b1, w2, b2)

    out3, hc_out, out2 = jax.jit(rnn_arch_2_1_forward)(x, hc, params)
    jax.block_until_ready((out3, hc_out, out2))

    assert out3.shape == (T * B, FC2)
    assert hc_out.shape == (1, B, HIDDEN)
    assert out2.shape == (T * B, FC1)

    r3, rhc, r2 = _reference(x, hc, w_ih, w_hh, w1, b1, w2, b2)
    assert float(jnp.max(jnp.abs(out3 - r3))) < 5e-2
    assert float(jnp.max(jnp.abs(hc_out - rhc))) < 5e-2
    assert float(jnp.max(jnp.abs(out2 - r2))) < 5e-2

    print("KERNEL_OK")
</pallas_src>

<mosaic_0001>
module attributes {stable_mosaic.version = 11 : i64} {
  func.func @_rnn_fused_kernel(%arg0: i32, %arg1: memref<8x256xf32, #tpu.memory_space<vmem>>, %arg2: memref<64x64xf32, #tpu.memory_space<vmem>>, %arg3: memref<256x256xbf16, #tpu.memory_space<vmem>>, %arg4: memref<64x256xbf16, #tpu.memory_space<vmem>>, %arg5: memref<256x64xbf16, #tpu.memory_space<vmem>>, %arg6: memref<1x64xf32, #tpu.memory_space<vmem>>, %arg7: memref<64x64xbf16, #tpu.memory_space<vmem>>, %arg8: memref<1x64xf32, #tpu.memory_space<vmem>>, %arg9: memref<64x128xf32, #tpu.memory_space<vmem>>, %arg10: memref<8x256xf32, #tpu.memory_space<vmem>>, %arg11: memref<64x256xf32, #tpu.memory_space<vmem>>, %arg12: memref<64x256xf32, #tpu.memory_space<vmem>>) attributes {dimension_semantics = [#tpu.dimension_semantics<arbitrary>], iteration_bounds = array<i64: 1>, scalar_prefetch = 0 : i64, scratch_operands = 2 : i64, tpu.core_type = #tpu.core_type<tc>, window_params = [{pipeline_mode = #tpu.pipeline_mode<synchronous>, transform_indices = @transform_0, window_bounds = array<i64: 8, 256>}, {transform_indices = @transform_1, window_bounds = array<i64: 64, 64>}, {pipeline_mode = #tpu.pipeline_mode<synchronous>, transform_indices = @transform_2, window_bounds = array<i64: 256, 256>}, {pipeline_mode = #tpu.pipeline_mode<synchronous>, transform_indices = @transform_3, window_bounds = array<i64: 64, 256>}, {pipeline_mode = #tpu.pipeline_mode<synchronous>, transform_indices = @transform_4, window_bounds = array<i64: 256, 64>}, {pipeline_mode = #tpu.pipeline_mode<synchronous>, transform_indices = @transform_5, window_bounds = array<i64: 1, 64>}, {pipeline_mode = #tpu.pipeline_mode<synchronous>, transform_indices = @transform_6, window_bounds = array<i64: 64, 64>}, {pipeline_mode = #tpu.pipeline_mode<synchronous>, transform_indices = @transform_7, window_bounds = array<i64: 1, 64>}, {transform_indices = @transform_8, window_bounds = array<i64: 64, 128>}, {pipeline_mode = #tpu.pipeline_mode<synchronous>, transform_indices = @transform_9, window_bounds = array<i64: 8, 256>}]} {
    %c0 = arith.constant 0 : index
    %c0_0 = arith.constant 0 : index
    %0 = vector.load %arg2[%c0, %c0_0] : memref<64x64xf32, #tpu.memory_space<vmem>>, vector<64x64xf32>
    %1 = arith.truncf %0 : vector<64x64xf32> to vector<64x64xbf16>
    %c0_1 = arith.constant 0 : index
    %c0_2 = arith.constant 0 : index
    %2 = vector.load %arg4[%c0_1, %c0_2] : memref<64x256xbf16, #tpu.memory_space<vmem>>, vector<64x256xbf16>
    %cst = arith.constant dense<0.000000e+00> : vector<64x256xf32>
    %3 = tpu.matmul %1, %2, %cst {dimension_numbers = #tpu.dot_dimension_numbers<[1], [0], [0], [1], [0, 0, 1, 1], [], []>} : vector<64x64xbf16>, vector<64x256xbf16>, vector<64x256xf32> -> vector<64x256xf32>
    %c0_3 = arith.constant 0 : index
    %c0_4 = arith.constant 0 : index
    %4 = vector.load %arg11[%c0_3, %c0_4] : memref<64x256xf32, #tpu.memory_space<vmem>>, vector<64x256xf32>
    tpu.vector_store %arg11[%c0_3, %c0_4], %3 {strides = array<i32>} : memref<64x256xf32, #tpu.memory_space<vmem>>, vector<64x256xf32>,
    %c0_i32 = arith.constant 0 : i32
    %5 = arith.cmpi eq, %arg0, %c0_i32 : i32
    %6 = arith.extui %5 : i1 to i32
    %c0_i32_5 = arith.constant 0 : i32
    %7 = arith.cmpi ne, %6, %c0_i32_5 : i32
    scf.if %7 {
      %c0_73 = arith.constant 0 : index
      %c0_74 = arith.constant 0 : index
      %114 = vector.load %arg1[%c0_73, %c0_74] : memref<8x256xf32, #tpu.memory_space<vmem>>, vector<8x256xf32>
      %c0_75 = arith.constant 0 : index
      %c0_76 = arith.constant 0 : index
      %115 = vector.load %arg10[%c0_75, %c0_76] : memref<8x256xf32, #tpu.memory_space<vmem>>, vector<8x256xf32>
      tpu.vector_store %arg10[%c0_75, %c0_76], %114 {strides = array<i32>} : memref<8x256xf32, #tpu.memory_space<vmem>>, vector<8x256xf32>,
    } else {
    }
    %c0_6 = arith.constant 0 : index
    %c0_7 = arith.constant 0 : index
    %8 = vector.load %arg10[%c0_6, %c0_7] : memref<8x256xf32, #tpu.memory_space<vmem>>, vector<8x256xf32>
    %c0_i32_8 = arith.constant 0 : i32
    %c8_i32 = arith.constant 8 : i32
    %9 = arith.muli %c0_i32_8, %c8_i32 : i32
    %10 = tpu.assume_multiple %9, 8 : i32
    %11 = arith.truncf %8 : vector<8x256xf32> to vector<8x256xbf16>
    %c0_9 = arith.constant 0 : index
    %c0_10 = arith.constant 0 : index
    %12 = vector.load %arg3[%c0_9, %c0_10] : memref<256x256xbf16, #tpu.memory_space<vmem>>, vector<256x256xbf16>
    %cst_11 = arith.constant dense<0.000000e+00> : vector<8x256xf32>
    %13 = tpu.matmul %11, %12, %cst_11 {dimension_numbers = #tpu.dot_dimension_numbers<[1], [0], [0], [1], [0, 0, 1, 1], [], []>} : vector<8x256xbf16>, vector<256x256xbf16>, vector<8x256xf32> -> vector<8x256xf32>
    %14 = arith.index_cast %10 : i32 to index
    %c0_12 = arith.constant 0 : index
    %15 = vector.load %arg11[%14, %c0_12] : memref<64x256xf32, #tpu.memory_space<vmem>>, vector<8x256xf32>
    %16 = arith.addf %13, %15 : vector<8x256xf32>
    %17 = math.tanh %16 : vector<8x256xf32>
    %18 = arith.index_cast %10 : i32 to index
    %c0_13 = arith.constant 0 : index
    %19 = vector.load %arg12[%18, %c0_13] : memref<64x256xf32, #tpu.memory_space<vmem>>, vector<8x256xf32>
    tpu.vector_store %arg12[%18, %c0_13], %17 {strides = array<i32>} : memref<64x256xf32, #tpu.memory_space<vmem>>, vector<8x256xf32>,
    %c1_i32 = arith.constant 1 : i32
    %c8_i32_14 = arith.constant 8 : i32
    %20 = arith.muli %c1_i32, %c8_i32_14 : i32
    %21 = tpu.assume_multiple %20, 8 : i32
    %22 = arith.truncf %17 : vector<8x256xf32> to vector<8x256xbf16>
    %c0_15 = arith.constant 0 : index
    %c0_16 = arith.constant 0 : index
    %23 = vector.load %arg3[%c0_15, %c0_16] : memref<256x256xbf16, #tpu.memory_space<vmem>>, vector<256x256xbf16>
    %cst_17 = arith.constant dense<0.000000e+00> : vector<8x256xf32>
    %24 = tpu.matmul %22, %23, %cst_17 {dimension_numbers = #tpu.dot_dimension_numbers<[1], [0], [0], [1], [0, 0, 1, 1], [], []>} : vector<8x256xbf16>, vector<256x256xbf16>, vector<8x256xf32> -> vector<8x256xf32>
    %25 = arith.index_cast %21 : i32 to index
    %c0_18 = arith.constant 0 : index
    %26 = vector.load %arg11[%25, %c0_18] : memref<64x256xf32, #tpu.memory_space<vmem>>, vector<8x256xf32>
    %27 = arith.addf %24, %26 : vector<8x256xf32>
    %28 = math.tanh %27 : vector<8x256xf32>
    %29 = arith.index_cast %21 : i32 to index
    %c0_19 = arith.constant 0 : index
    %30 = vector.load %arg12[%29, %c0_19] : memref<64x256xf32, #tpu.memory_space<vmem>>, vector<8x256xf32>
    tpu.vector_store %arg12[%29, %c0_19], %28 {strides = array<i32>} : memref<64x256xf32, #tpu.memory_space<vmem>>, vector<8x256xf32>,
    %c2_i32 = arith.constant 2 : i32
    %c8_i32_20 = arith.constant 8 : i32
    %31 = arith.muli %c2_i32, %c8_i32_20 : i32
    %32 = tpu.assume_multiple %31, 8 : i32
    %33 = arith.truncf %28 : vector<8x256xf32> to vector<8x256xbf16>
    %c0_21 = arith.constant 0 : index
    %c0_22 = arith.constant 0 : index
    %34 = vector.load %arg3[%c0_21, %c0_22] : memref<256x256xbf16, #tpu.memory_space<vmem>>, vector<256x256xbf16>
    %cst_23 = arith.constant dense<0.000000e+00> : vector<8x256xf32>
    %35 = tpu.matmul %33, %34, %cst_23 {dimension_numbers = #tpu.dot_dimension_numbers<[1], [0], [0], [1], [0, 0, 1, 1], [], []>} : vector<8x256xbf16>, vector<256x256xbf16>, vector<8x256xf32> -> vector<8x256xf32>
    %36 = arith.index_cast %32 : i32 to index
    %c0_24 = arith.constant 0 : index
    %37 = vector.load %arg11[%36, %c0_24] : memref<64x256xf32, #tpu.memory_space<vmem>>, vector<8x256xf32>
    %38 = arith.addf %35, %37 : vector<8x256xf32>
    %39 = math.tanh %38 : vector<8x256xf32>
    %40 = arith.index_cast %32 : i32 to index
    %c0_25 = arith.constant 0 : index
    %41 = vector.load %arg12[%40, %c0_25] : memref<64x256xf32, #tpu.memory_space<vmem>>, vector<8x256xf32>
    tpu.vector_store %arg12[%40, %c0_25], %39 {strides = array<i32>} : memref<64x256xf32, #tpu.memory_space<vmem>>, vector<8x256xf32>,
    %c3_i32 = arith.constant 3 : i32
    %c8_i32_26 = arith.constant 8 : i32
    %42 = arith.muli %c3_i32, %c8_i32_26 : i32
    %43 = tpu.assume_multiple %42, 8 : i32
    %44 = arith.truncf %39 : vector<8x256xf32> to vector<8x256xbf16>
    %c0_27 = arith.constant 0 : index
    %c0_28 = arith.constant 0 : index
    %45 = vector.load %arg3[%c0_27, %c0_28] : memref<256x256xbf16, #tpu.memory_space<vmem>>, vector<256x256xbf16>
    %cst_29 = arith.constant dense<0.000000e+00> : vector<8x256xf32>
    %46 = tpu.matmul %44, %45, %cst_29 {dimension_numbers = #tpu.dot_dimension_numbers<[1], [0], [0], [1], [0, 0, 1, 1], [], []>} : vector<8x256xbf16>, vector<256x256xbf16>, vector<8x256xf32> -> vector<8x256xf32>
    %47 = arith.index_cast %43 : i32 to index
    %c0_30 = arith.constant 0 : index
    %48 = vector.load %arg11[%47, %c0_30] : memref<64x256xf32, #tpu.memory_space<vmem>>, vector<8x256xf32>
    %49 = arith.addf %46, %48 : vector<8x256xf32>
    %50 = math.tanh %49 : vector<8x256xf32>
    %51 = arith.index_cast %43 : i32 to index
    %c0_31 = arith.constant 0 : index
    %52 = vector.load %arg12[%51, %c0_31] : memref<64x256xf32, #tpu.memory_space<vmem>>, vector<8x256xf32>
    tpu.vector_store %arg12[%51, %c0_31], %50 {strides = array<i32>} : memref<64x256xf32, #tpu.memory_space<vmem>>, vector<8x256xf32>,
    %c4_i32 = arith.constant 4 : i32
    %c8_i32_32 = arith.constant 8 : i32
    %53 = arith.muli %c4_i32, %c8_i32_32 : i32
    %54 = tpu.assume_multiple %53, 8 : i32
    %55 = arith.truncf %50 : vector<8x256xf32> to vector<8x256xbf16>
    %c0_33 = arith.constant 0 : index
    %c0_34 = arith.constant 0 : index
    %56 = vector.load %arg3[%c0_33, %c0_34] : memref<256x256xbf16, #tpu.memory_space<vmem>>, vector<256x256xbf16>
    %cst_35 = arith.constant dense<0.000000e+00> : vector<8x256xf32>
    %57 = tpu.matmul %55, %56, %cst_35 {dimension_numbers = #tpu.dot_dimension_numbers<[1], [0], [0], [1], [0, 0, 1, 1], [], []>} : vector<8x256xbf16>, vector<256x256xbf16>, vector<8x256xf32> -> vector<8x256xf32>
    %58 = arith.index_cast %54 : i32 to index
    %c0_36 = arith.constant 0 : index
    %59 = vector.load %arg11[%58, %c0_36] : memref<64x256xf32, #tpu.memory_space<vmem>>, vector<8x256xf32>
    %60 = arith.addf %57, %59 : vector<8x256xf32>
    %61 = math.tanh %60 : vector<8x256xf32>
    %62 = arith.index_cast %54 : i32 to index
    %c0_37 = arith.constant 0 : index
    %63 = vector.load %arg12[%62, %c0_37] : memref<64x256xf32, #tpu.memory_space<vmem>>, vector<8x256xf32>
    tpu.vector_store %arg12[%62, %c0_37], %61 {strides = array<i32>} : memref<64x256xf32, #tpu.memory_space<vmem>>, vector<8x256xf32>,
    %c5_i32 = arith.constant 5 : i32
    %c8_i32_38 = arith.constant 8 : i32
    %64 = arith.muli %c5_i32, %c8_i32_38 : i32
    %65 = tpu.assume_multiple %64, 8 : i32
    %66 = arith.truncf %61 : vector<8x256xf32> to vector<8x256xbf16>
    %c0_39 = arith.constant 0 : index
    %c0_40 = arith.constant 0 : index
    %67 = vector.load %arg3[%c0_39, %c0_40] : memref<256x256xbf16, #tpu.memory_space<vmem>>, vector<256x256xbf16>
    %cst_41 = arith.constant dense<0.000000e+00> : vector<8x256xf32>
    %68 = tpu.matmul %66, %67, %cst_41 {dimension_numbers = #tpu.dot_dimension_numbers<[1], [0], [0], [1], [0, 0, 1, 1], [], []>} : vector<8x256xbf16>, vector<256x256xbf16>, vector<8x256xf32> -> vector<8x256xf32>
    %69 = arith.index_cast %65 : i32 to index
    %c0_42 = arith.constant 0 : index
    %70 = vector.load %arg11[%69, %c0_42] : memref<64x256xf32, #tpu.memory_space<vmem>>, vector<8x256xf32>
    %71 = arith.addf %68, %70 : vector<8x256xf32>
    %72 = math.tanh %71 : vector<8x256xf32>
    %73 = arith.index_cast %65 : i32 to index
    %c0_43 = arith.constant 0 : index
    %74 = vector.load %arg12[%73, %c0_43] : memref<64x256xf32, #tpu.memory_space<vmem>>, vector<8x256xf32>
    tpu.vector_store %arg12[%73, %c0_43], %72 {strides = array<i32>} : memref<64x256xf32, #tpu.memory_space<vmem>>, vector<8x256xf32>,
    %c6_i32 = arith.constant 6 : i32
    %c8_i32_44 = arith.constant 8 : i32
    %75 = arith.muli %c6_i32, %c8_i32_44 : i32
    %76 = tpu.assume_multiple %75, 8 : i32
    %77 = arith.truncf %72 : vector<8x256xf32> to vector<8x256xbf16>
    %c0_45 = arith.constant 0 : index
    %c0_46 = arith.constant 0 : index
    %78 = vector.load %arg3[%c0_45, %c0_46] : memref<256x256xbf16, #tpu.memory_space<vmem>>, vector<256x256xbf16>
    %cst_47 = arith.constant dense<0.000000e+00> : vector<8x256xf32>
    %79 = tpu.matmul %77, %78, %cst_47 {dimension_numbers = #tpu.dot_dimension_numbers<[1], [0], [0], [1], [0, 0, 1, 1], [], []>} : vector<8x256xbf16>, vector<256x256xbf16>, vector<8x256xf32> -> vector<8x256xf32>
    %80 = arith.index_cast %76 : i32 to index
    %c0_48 = arith.constant 0 : index
    %81 = vector.load %arg11[%80, %c0_48] : memref<64x256xf32, #tpu.memory_space<vmem>>, vector<8x256xf32>
    %82 = arith.addf %79, %81 : vector<8x256xf32>
    %83 = math.tanh %82 : vector<8x256xf32>
    %84 = arith.index_cast %76 : i32 to index
    %c0_49 = arith.constant 0 : index
    %85 = vector.load %arg12[%84, %c0_49] : memref<64x256xf32, #tpu.memory_space<vmem>>, vector<8x256xf32>
    tpu.vector_store %arg12[%84, %c0_49], %83 {strides = array<i32>} : memref<64x256xf32, #tpu.memory_space<vmem>>, vector<8x256xf32>,
    %c7_i32 = arith.constant 7 : i32
    %c8_i32_50 = arith.constant 8 : i32
    %86 = arith.muli %c7_i32, %c8_i32_50 : i32
    %87 = tpu.assume_multiple %86, 8 : i32
    %88 = arith.truncf %83 : vector<8x256xf32> to vector<8x256xbf16>
    %c0_51 = arith.constant 0 : index
    %c0_52 = arith.constant 0 : index
    %89 = vector.load %arg3[%c0_51, %c0_52] : memref<256x256xbf16, #tpu.memory_space<vmem>>, vector<256x256xbf16>
    %cst_53 = arith.constant dense<0.000000e+00> : vector<8x256xf32>
    %90 = tpu.matmul %88, %89, %cst_53 {dimension_numbers = #tpu.dot_dimension_numbers<[1], [0], [0], [1], [0, 0, 1, 1], [], []>} : vector<8x256xbf16>, vector<256x256xbf16>, vector<8x256xf32> -> vector<8x256xf32>
    %91 = arith.index_cast %87 : i32 to index
    %c0_54 = arith.constant 0 : index
    %92 = vector.load %arg11[%91, %c0_54] : memref<64x256xf32, #tpu.memory_space<vmem>>, vector<8x256xf32>
    %93 = arith.addf %90, %92 : vector<8x256xf32>
    %94 = math.tanh %93 : vector<8x256xf32>
    %95 = arith.index_cast %87 : i32 to index
    %c0_55 = arith.constant 0 : index
    %96 = vector.load %arg12[%95, %c0_55] : memref<64x256xf32, #tpu.memory_space<vmem>>, vector<8x256xf32>
    tpu.vector_store %arg12[%95, %c0_55], %94 {strides = array<i32>} : memref<64x256xf32, #tpu.memory_space<vmem>>, vector<8x256xf32>,
    %c8_i32_56 = arith.constant 8 : i32
    %c0_57 = arith.constant 0 : index
    %c0_58 = arith.constant 0 : index
    %97 = vector.load %arg10[%c0_57, %c0_58] : memref<8x256xf32, #tpu.memory_space<vmem>>, vector<8x256xf32>
    tpu.vector_store %arg10[%c0_57, %c0_58], %94 {strides = array<i32>} : memref<8x256xf32, #tpu.memory_space<vmem>>, vector<8x256xf32>,
    %c0_59 = arith.constant 0 : index
    %c0_60 = arith.constant 0 : index
    %98 = vector.load %arg12[%c0_59, %c0_60] : memref<64x256xf32, #tpu.memory_space<vmem>>, vector<64x256xf32>
    %99 = arith.truncf %98 : vector<64x256xf32> to vector<64x256xbf16>
    %c0_61 = arith.constant 0 : index
    %c0_62 = arith.constant 0 : index
    %100 = vector.load %arg5[%c0_61, %c0_62] : memref<256x64xbf16, #tpu.memory_space<vmem>>, vector<256x64xbf16>
    %cst_63 = arith.constant dense<0.000000e+00> : vector<64x64xf32>
    %101 = tpu.matmul %99, %100, %cst_63 {dimension_numbers = #tpu.dot_dimension_numbers<[1], [0], [0], [1], [0, 0, 1, 1], [], []>} : vector<64x256xbf16>, vector<256x64xbf16>, vector<64x64xf32> -> vector<64x64xf32>
    %c0_64 = arith.constant 0 : index
    %c0_65 = arith.constant 0 : index
    %102 = vector.load %arg6[%c0_64, %c0_65] : memref<1x64xf32, #tpu.memory_space<vmem>>, vector<1x64xf32>
    %103 = vector.broadcast %102 : vector<1x64xf32> to vector<64x64xf32>
    %104 = arith.addf %101, %103 : vector<64x64xf32>
    %105 = math.tanh %104 : vector<64x64xf32>
    %106 = arith.truncf %105 : vector<64x64xf32> to vector<64x64xbf16>
    %c0_66 = arith.constant 0 : index
    %c0_67 = arith.constant 0 : index
    %107 = vector.load %arg7[%c0_66, %c0_67] : memref<64x64xbf16, #tpu.memory_space<vmem>>, vector<64x64xbf16>
    %cst_68 = arith.constant dense<0.000000e+00> : vector<64x64xf32>
    %108 = tpu.matmul %106, %107, %cst_68 {dimension_numbers = #tpu.dot_dimension_numbers<[1], [0], [0], [1], [0, 0, 1, 1], [], []>} : vector<64x64xbf16>, vector<64x64xbf16>, vector<64x64xf32> -> vector<64x64xf32>
    %c0_69 = arith.constant 0 : index
    %c0_70 = arith.constant 0 : index
    %109 = vector.load %arg8[%c0_69, %c0_70] : memref<1x64xf32, #tpu.memory_space<vmem>>, vector<1x64xf32>
    %110 = vector.broadcast %109 : vector<1x64xf32> to vector<64x64xf32>
    %111 = arith.addf %108, %110 : vector<64x64xf32>
    %112 = tpu.concatenate %105, %111 in 1 : vector<64x64xf32>, vector<64x64xf32> -> vector<64x128xf32>
    %c0_71 = arith.constant 0 : index
    %c0_72 = arith.constant 0 : index
    %113 = vector.load %arg9[%c0_71, %c0_72] : memref<64x128xf32, #tpu.memory_space<vmem>>, vector<64x128xf32>
    tpu.vector_store %arg9[%c0_71, %c0_72], %112 {strides = array<i32>} : memref<64x128xf32, #tpu.memory_space<vmem>>, vector<64x128xf32>,
    return
  }
  func.func @transform_0(%arg0: i32) -> (i32, i32) {
    %c0_i32 = arith.constant 0 : i32
    %c0_i32_0 = arith.constant 0 : i32
    %c0_i32_1 = arith.constant 0 : i32
    return %c0_i32, %c0_i32_0 : i32, i32
  }
  func.func @transform_1(%arg0: i32) -> (i32, i32) {
    %c0_i32 = arith.constant 0 : i32
    %c0_i32_0 = arith.constant 0 : i32
    return %arg0, %c0_i32 : i32, i32
  }
  func.func @transform_2(%arg0: i32) -> (i32, i32) {
    %c0_i32 = arith.constant 0 : i32
    %c0_i32_0 = arith.constant 0 : i32
    %c0_i32_1 = arith.constant 0 : i32
    return %c0_i32, %c0_i32_0 : i32, i32
  }
  func.func @transform_3(%arg0: i32) -> (i32, i32) {
    %c0_i32 = arith.constant 0 : i32
    %c0_i32_0 = arith.constant 0 : i32
    %c0_i32_1 = arith.constant 0 : i32
    return %c0_i32, %c0_i32_0 : i32, i32
  }
  func.func @transform_4(%arg0: i32) -> (i32, i32) {
    %c0_i32 = arith.constant 0 : i32
    %c0_i32_0 = arith.constant 0 : i32
    %c0_i32_1 = arith.constant 0 : i32
    return %c0_i32, %c0_i32_0 : i32, i32
  }
  func.func @transform_5(%arg0: i32) -> (i32, i32) {
    %c0_i32 = arith.constant 0 : i32
    %c0_i32_0 = arith.constant 0 : i32
    %c0_i32_1 = arith.constant 0 : i32
    return %c0_i32, %c0_i32_0 : i32, i32
  }
  func.func @transform_6(%arg0: i32) -> (i32, i32) {
    %c0_i32 = arith.constant 0 : i32
    %c0_i32_0 = arith.constant 0 : i32
    %c0_i32_1 = arith.constant 0 : i32
    return %c0_i32, %c0_i32_0 : i32, i32
  }
  func.func @transform_7(%arg0: i32) -> (i32, i32) {
    %c0_i32 = arith.constant 0 : i32
    %c0_i32_0 = arith.constant 0 : i32
    %c0_i32_1 = arith.constant 0 : i32
    return %c0_i32, %c0_i32_0 : i32, i32
  }
  func.func @transform_8(%arg0: i32) -> (i32, i32) {
    %c0_i32 = arith.constant 0 : i32
    %c0_i32_0 = arith.constant 0 : i32
    return %arg0, %c0_i32 : i32, i32
  }
  func.func @transform_9(%arg0: i32) -> (i32, i32) {
    %c0_i32 = arith.constant 0 : i32
    %c0_i32_0 = arith.constant 0 : i32
    %c0_i32_1 = arith.constant 0 : i32
    return %c0_i32, %c0_i32_0 : i32, i32
  }
}

</mosaic_0001>

<bundles_post_ra>
// kernel: rnn_arch_2_1_forward.1
= control target key start
LH: loop header
LB: loop body
LE: loop exit
PB: predicated region body
PF: predicated region fallthrough
CT: control target
= control target key end

     0   :  { %15 = vsyncpa [#allocation5], 0  ;;  %s3174_s30 = smov [#allocation4]   ;;  %s4045_s0 = inlined_call_operand.vmem [shape: f32[8,256], index: 0, kind: input, shape index: {}]   ;;  %s4046_s1 = inlined_call_operand.vmem [shape: f32[64,64], index: 1, kind: input, shape index: {}]   ;;  %s4047_s2 = inlined_call_operand.vmem [shape: bf16[256,256], index: 2, kind: input, shape index: {}]   ;;  %s4048_s3 = inlined_call_operand.hbm [shape: bf16[64,256], index: 3, kind: input, shape index: {}]   ;;  %s4049_s4 = inlined_call_operand.vmem [shape: bf16[256,64], index: 4, kind: input, shape index: {}]   ;;  %s4050_s5 = inlined_call_operand.vmem [shape: f32[1,64], index: 5, kind: input, shape index: {}]   ;;  %s4051_s6 = inlined_call_operand.vmem [shape: bf16[64,64], index: 6, kind: input, shape index: {}]   ;;  %s4052_s7 = inlined_call_operand.vmem [shape: f32[1,64], index: 7, kind: input, shape index: {}]   ;;  %s4053_s8 = inlined_call_operand.vmem [shape: f32[64,128], index: 8, kind: output, shape index: {0}]   ;;  %s4054_s9 = inlined_call_operand.vmem [shape: f32[8,256], index: 9, kind: output, shape index: {1}]  }
   0x1   :  { %s27_s10 = sshll.u32 %s3174_s30, 4  ;;  %s3150_s13 = scalar_lea.hbm %s4048_s3, 1024  ;;  %s28_s10 = int_to_ptr.vmem [resolvable:$true] %s27_s10 }
   0x2   :  { %p3151_p0 = scmp.ne.s32.totalorder %s4048_s3, %s3150_s13  ;;  %p3154_p1 = scmp.lt.u32.totalorder %s3150_s13, %s4048_s3 }
   0x4   :  { %p3156_p2 = pnand %p3154_p1, %p3151_p0 }
   0x6   :  { %3159 = shalt.err (!%p3156_p2)
}
   0x7   :  { %s3160_s18 = scalar_lea.vmem %s28_s10, 1024  ;;  %p3165_p4 = scmp.lt.s32.totalorder %s28_s10, %s28_s10 }
   0x8   :  { %p3161_p3 = scmp.ne.s32.totalorder %s28_s10, %s3160_s18  ;;  %p3166_p5 = scmp.lt.s32.totalorder %s3160_s18, %s3160_s18 }
   0xa   :  { %p3167_p6 = por %p3166_p5, %p3165_p4 }
   0xc   :  { %p3168_p7 = pnand %p3167_p6, %p3161_p3 }
   0xe   :  { %3171 = shalt.err (!%p3168_p7)
}
   0xf   :  { %s3175_s19 = smov 128   ;;  %s3176_s20 = smov 8  }
  0x10   :  { %33 = dma.hbm_to_vmem [thread:$0]  %s4048_s3, 1024, %s28_s10, [#allocation5], %s3175_s19, %s3175_s19, %s3176_s20  }
  0x11   :  { %3172 = dma.done.wait [#allocation5], 1024  }
  0x12   :  { %3173 = vsyncadd [#allocation5], 4294966272  ;;  %v3177_v0 = vmov 0   ;;  %v3245_v1 = vld [vmem:[%s4047_s2 + $0x4] ss:$8 sps:$4 sm:$0xff]   ;;  %vm106_vm0 = vcmask 523264  }
  0x13   :  { %151 = vmatprep.mubr.bf16.mxu0 %v3177_v0  ;;  %v3250_v2 = vld [vmem:[%s4047_s2] ss:$8 sps:$4 sm:$0xff]   ;;  %417 = vmatprep.subr.bf16.mxu1 %v3245_v1  ;;  %v3256_v3 = vld [vmem:[%s4047_s2 + $0x14] ss:$8 sps:$4 sm:$0xff]   ;;  %v3262_v4 = vld [vmem:[%s4047_s2 + $0x10] ss:$8 sps:$4 sm:$0xff]  }
  0x14   :  { %418 = vmatpush1.bf16.msra.mxu1 %v3250_v2  ;;  %v3268_v5 = vld [vmem:[%s4047_s2 + $0x24] ss:$8 sps:$4 sm:$0xff]   ;;  %v3274_v6 = vld [vmem:[%s4047_s2 + $0x20] ss:$8 sps:$4 sm:$0xff]   ;;  %v3280_v7 = vld [vmem:[%s4047_s2 + $0x34] ss:$8 sps:$4 sm:$0xff]  }
  0x15   :  { %419 = vmatprep.subr.bf16.mxu1 %v3256_v3  ;;  %v3286_v8 = vld [vmem:[%s4047_s2 + $0x30] ss:$8 sps:$4 sm:$0xff]   ;;  %v3292_v9 = vld [vmem:[%s4047_s2 + $0x44] ss:$8 sps:$4 sm:$0xff]   ;;  %v3298_v10 = vld [vmem:[%s4047_s2 + $0x40] ss:$8 sps:$4 sm:$0xff]  }
  0x16   :  { %v3304_v11 = vld [vmem:[%s4047_s2 + $0x54] ss:$8 sps:$4 sm:$0xff]   ;;  %v3009_v12 = vld [vmem:[#allocation4 + $0x4] ss:$8 sps:$4 sm:$0xff]   ;;  %v3012_v13 = vld [vmem:[#allocation4] ss:$8 sps:$4 sm:$0xff]  }
  0x17   :  { %119 = vmatprep.subr.bf16.mxu0 %v3009_v12  ;;  %v3310_v14 = vld [vmem:[%s4047_s2 + $0x50] ss:$8 sps:$4 sm:$0xff]   ;;  %v3015_v15 = vld [vmem:[#allocation4 + $0x14] ss:$8 sps:$4 sm:$0xff]   ;;  %v3316_v17 = vld [vmem:[%s4047_s2 + $0x64] ss:$8 sps:$4 sm:$0xff]  }
  0x18   :  { %420 = vmatpush1.bf16.msra.mxu1 %v3262_v4  ;;  %120 = vmatpush1.bf16.msra.mxu0 %v3012_v13  ;;  %v3018_v16 = vld [vmem:[#allocation4 + $0x10] ss:$8 sps:$4 sm:$0xff]   ;;  %v3021_v18 = vld [vmem:[#allocation4 + $0x24] ss:$8 sps:$4 sm:$0xff]   ;;  %v3321_v19 = vld [vmem:[%s4047_s2 + $0x60] ss:$8 sps:$4 sm:$0xff]  }
  0x19   :  { %421 = vmatprep.subr.bf16.mxu1 %v3268_v5  ;;  %121 = vmatprep.subr.bf16.mxu0 %v3015_v15  ;;  %v3024_v20 = vld [vmem:[#allocation4 + $0x20] ss:$8 sps:$4 sm:$0xff]   ;;  %v3328_v21 = vld [vmem:[%s4047_s2 + $0x74] ss:$8 sps:$4 sm:$0xff]   ;;  %v3333_v23 = vld [vmem:[%s4047_s2 + $0x70] ss:$8 sps:$4 sm:$0xff]  }
  0x1a   :  { %v3027_v22 = vld [vmem:[#allocation4 + $0x34] ss:$8 sps:$4 sm:$0xff]   ;;  %v3030_v24 = vld [vmem:[#allocation4 + $0x30] ss:$8 sps:$4 sm:$0xff]   ;;  %v46_v25 = vld [vmem:[%s4046_s1] sm:$0xff]  ;;  %s3178_s28 = smov 64  }
  0x1b   :  { %v47_v26 = vld [vmem:[%s4046_s1 + $0x8] sm:$0xff]  ;;  %v3359_v31 = vld [vmem:[%s4047_s2 + $0x94] ss:$8 sps:$4 sm:$0xff]   ;;  %v3367_v33 = vld [vmem:[%s4047_s2 + $0x90] ss:$8 sps:$4 sm:$0xff]  }
  0x1c   :  { %422 = vmatpush1.bf16.msra.mxu1 %v3274_v6  ;;  %122 = vmatpush1.bf16.msra.mxu0 %v3018_v16  ;;  %v213_v27 = vld [vmem:[%s4045_s0 + $0x8] sm:$0xff]  ;;  %v54_v32 = vpack.c.bf16 %v47_v26, %v46_v25  ;;  %v48_v34 = vld [vmem:[%s4046_s1 + $0x10] sm:$0xff]  ;;  %v49_v35 = vld [vmem:[%s4046_s1 + $0x18] sm:$0xff] }
  0x1d   :  { %423 = vmatprep.subr.bf16.mxu1 %v3280_v7  ;;  %123 = vmatprep.subr.bf16.mxu0 %v3021_v18  ;;  %v3349_v28 = vld [vmem:[%s4047_s2 + $0x84] ss:$8 sps:$4 sm:$0xff]   ;;  %v219_v29 = vpack.c.bf16 %v213_v27, %v213_v27  ;;  %v3354_v30 = vld [vmem:[%s4047_s2 + $0x80] ss:$8 sps:$4 sm:$0xff]   ;;  %v3394_v38 = vld [vmem:[%s4047_s2 + $0xb4] ss:$8 sps:$4 sm:$0xff]   ;;  %v55_v39 = vpack.c.bf16 %v49_v35, %v48_v34 }
  0x1e   :  { %v3378_v36 = vld [vmem:[%s4047_s2 + $0xa4] ss:$8 sps:$4 sm:$0xff]   ;;  %v3388_v37 = vld [vmem:[%s4047_s2 + $0xa0] ss:$8 sps:$4 sm:$0xff]   ;;  %v3403_v40 = vld [vmem:[%s4047_s2 + $0xb0] ss:$8 sps:$4 sm:$0xff]  }
  0x1f   :  { %449 = vmatprep.mubr.bf16.mxu1 %v219_v29  ;;  %v3408_v41 = vld [vmem:[%s4047_s2 + $0xc4] ss:$8 sps:$4 sm:$0xff]   ;;  %v3418_v42 = vld [vmem:[%s4047_s2 + $0xc0] ss:$8 sps:$4 sm:$0xff]   ;;  %v3424_v43 = vld [vmem:[%s4047_s2 + $0xd4] ss:$8 sps:$4 sm:$0xff]  }
  0x20   :  { %424 = vmatpush1.bf16.msra.mxu1 %v3286_v8  ;;  %124 = vmatpush1.bf16.msra.mxu0 %v3024_v20  ;;  %v3433_v44 = vld [vmem:[%s4047_s2 + $0xd0] ss:$8 sps:$4 sm:$0xff]   ;;  %v3441_v45 = vld [vmem:[%s4047_s2 + $0xe4] ss:$8 sps:$4 sm:$0xff]   ;;  %v3448_v46 = vld [vmem:[%s4047_s2 + $0xe0] ss:$8 sps:$4 sm:$0xff]  }
  0x21   :  { %425 = vmatprep.subr.bf16.mxu1 %v3292_v9  ;;  %125 = vmatprep.subr.bf16.mxu0 %v3027_v22  ;;  %v3455_v47 = vld [vmem:[%s4047_s2 + $0xf4] ss:$8 sps:$4 sm:$0xff]   ;;  %v3462_v48 = vld [vmem:[%s4047_s2 + $0xf0] ss:$8 sps:$4 sm:$0xff]   ;;  %v212_v49 = vld [vmem:[%s4045_s0] sm:$0xff] }
  0x22   :  { %v218_v50 = vpack.c.bf16 %v212_v49, %v212_v49  ;;  %v50_v51 = vld [vmem:[%s4046_s1 + $0x20] sm:$0xff]  ;;  %v51_v52 = vld [vmem:[%s4046_s1 + $0x28] sm:$0xff]  ;;  %v52_v54 = vld [vmem:[%s4046_s1 + $0x30] sm:$0xff] }
  0x23   :  { %v56_v53 = vpack.c.bf16 %v51_v52, %v50_v51  ;;  %v53_v55 = vld [vmem:[%s4046_s1 + $0x38] sm:$0xff] }
  0x24   :  { %426 = vmatpush1.bf16.msra.mxu1 %v3298_v10  ;;  %126 = vmatpush1.bf16.msra.mxu0 %v3030_v24  ;;  %v57_v56 = vpack.c.bf16 %v53_v55, %v52_v54 }
  0x25   :  { %427 = vmatprep.subr.bf16.mxu1 %v3304_v11  ;;  %663 = vmatprep.subr.bf16.mxu0 %v3245_v1 }
  0x27   :  { %2619 = vmatmul.mubr.msk.bf16.vlgmr.msra.gmra.mrb[0].mxu0 %vm106_vm0, %v54_v32 }
  0x28   :  { %428 = vmatpush1.bf16.msra.mxu1 %v3310_v14  ;;  %664 = vmatpush1.bf16.msra.mxu0 %v3250_v2 }
  0x29   :  { %429 = vmatprep.subr.bf16.mxu1 %v3316_v17  ;;  %665 = vmatprep.subr.bf16.mxu0 %v3256_v3 }
  0x2a   :  { %161 = vmatprep.mubr.bf16.mxu0 %v3177_v0 }
  0x2c   :  { %430 = vmatpush1.bf16.msra.mxu1 %v3321_v19  ;;  %666 = vmatpush1.bf16.msra.mxu0 %v3262_v4 }
  0x2d   :  { %431 = vmatprep.subr.bf16.mxu1 %v3328_v21  ;;  %667 = vmatprep.subr.bf16.mxu0 %v3268_v5 }
  0x2f   :  { %2620 = vmatmul.mubr.msk.bf16.gmra.mrb[4].mxu0 %vm106_vm0, %v55_v39 }
  0x30   :  { %432 = vmatpush1.bf16.msra.mxu1 %v3333_v23  ;;  %668 = vmatpush1.bf16.msra.mxu0 %v3274_v6 }
  0x31   :  { %433 = vmatprep.subr.bf16.mxu1 %v3349_v28  ;;  %669 = vmatprep.subr.bf16.mxu0 %v3280_v7 }
  0x32   :  { %171 = vmatprep.mubr.bf16.mxu0 %v3177_v0 }
  0x34   :  { %434 = vmatpush1.bf16.msra.mxu1 %v3354_v30  ;;  %670 = vmatpush1.bf16.msra.mxu0 %v3286_v8 }
  0x35   :  { %435 = vmatprep.subr.bf16.mxu1 %v3359_v31  ;;  %671 = vmatprep.subr.bf16.mxu0 %v3292_v9 }
  0x37   :  { %2621 = vmatmul.mubr.msk.bf16.gmra.mrb[8].mxu0 %vm106_vm0, %v56_v53 }
  0x38   :  { %436 = vmatpush1.bf16.msra.mxu1 %v3367_v33  ;;  %672 = vmatpush1.bf16.msra.mxu0 %v3298_v10 }
  0x39   :  { %437 = vmatprep.subr.bf16.mxu1 %v3378_v36  ;;  %673 = vmatprep.subr.bf16.mxu0 %v3304_v11 }
  0x3a   :  { %181 = vmatprep.mubr.bf16.mxu0 %v3177_v0 }
  0x3c   :  { %438 = vmatpush1.bf16.msra.mxu1 %v3388_v37  ;;  %674 = vmatpush1.bf16.msra.mxu0 %v3310_v14 }
  0x3d   :  { %439 = vmatprep.subr.bf16.mxu1 %v3394_v38  ;;  %675 = vmatprep.subr.bf16.mxu0 %v3316_v17 }
  0x3f   :  { %2622 = vmatmul.mubr.msk.bf16.gmra.mrb[12].mxu0 %vm106_vm0, %v57_v56 }
  0x40   :  { %440 = vmatpush1.bf16.msra.mxu1 %v3403_v40  ;;  %676 = vmatpush1.bf16.msra.mxu0 %v3321_v19 }
  0x41   :  { %441 = vmatprep.subr.bf16.mxu1 %v3408_v41  ;;  %677 = vmatprep.subr.bf16.mxu0 %v3328_v21 }
  0x44   :  { %442 = vmatpush1.bf16.msra.mxu1 %v3418_v42  ;;  %678 = vmatpush1.bf16.msra.mxu0 %v3333_v23 }
  0x45   :  { %443 = vmatprep.subr.bf16.mxu1 %v3424_v43  ;;  %679 = vmatprep.subr.bf16.mxu0 %v3349_v28 }
  0x48   :  { %444 = vmatpush1.bf16.msra.mxu1 %v3433_v44  ;;  %680 = vmatpush1.bf16.msra.mxu0 %v3354_v30 }
  0x49   :  { %445 = vmatprep.subr.bf16.mxu1 %v3441_v45  ;;  %681 = vmatprep.subr.bf16.mxu0 %v3359_v31 }
  0x4c   :  { %446 = vmatpush1.bf16.msra.mxu1 %v3448_v46  ;;  %682 = vmatpush1.bf16.msra.mxu0 %v3367_v33 }
  0x4d   :  { %447 = vmatprep.subr.bf16.mxu1 %v3455_v47  ;;  %683 = vmatprep.subr.bf16.mxu0 %v3378_v36 }
  0x50   :  { %448 = vmatpush1.bf16.msra.mxu1 %v3462_v48  ;;  %684 = vmatpush1.bf16.msra.mxu0 %v3388_v37 }
  0x51   :  { %909 = vmatprep.subr.bf16.mxu1 %v3245_v1  ;;  %685 = vmatprep.subr.bf16.mxu0 %v3394_v38 }
  0x53   :  { %450 = vmatmul.mubr.bf16.vlgmr.msra.gmra.mrb[0].mxu1 %v218_v50 }
  0x54   :  { %910 = vmatpush1.bf16.msra.mxu1 %v3250_v2  ;;  %686 = vmatpush1.bf16.msra.mxu0 %v3403_v40 }
  0x55   :  { %911 = vmatprep.subr.bf16.mxu1 %v3256_v3  ;;  %687 = vmatprep.subr.bf16.mxu0 %v3408_v41 }
  0x58   :  { %912 = vmatpush1.bf16.msra.mxu1 %v3262_v4  ;;  %688 = vmatpush1.bf16.msra.mxu0 %v3418_v42 }
  0x59   :  { %913 = vmatprep.subr.bf16.mxu1 %v3268_v5  ;;  %689 = vmatprep.subr.bf16.mxu0 %v3424_v43 }
  0x5c   :  { %914 = vmatpush1.bf16.msra.mxu1 %v3274_v6  ;;  %690 = vmatpush1.bf16.msra.mxu0 %v3433_v44 }
  0x5d   :  { %915 = vmatprep.subr.bf16.mxu1 %v3280_v7  ;;  %691 = vmatprep.subr.bf16.mxu0 %v3441_v45 }
  0x60   :  { %916 = vmatpush1.bf16.msra.mxu1 %v3286_v8  ;;  %692 = vmatpush1.bf16.msra.mxu0 %v3448_v46 }
  0x61   :  { %917 = vmatprep.subr.bf16.mxu1 %v3292_v9  ;;  %693 = vmatprep.subr.bf16.mxu0 %v3455_v47 }
  0x64   :  { %918 = vmatpush1.bf16.msra.mxu1 %v3298_v10  ;;  %694 = vmatpush1.bf16.msra.mxu0 %v3462_v48 }
  0x65   :  { %919 = vmatprep.subr.bf16.mxu1 %v3304_v11  ;;  %1155 = vmatprep.subr.bf16.mxu0 %v3245_v1 }
  0x68   :  { %920 = vmatpush1.bf16.msra.mxu1 %v3310_v14 }
  0x69   :  { %921 = vmatprep.subr.bf16.mxu1 %v3316_v17 }
  0x6c   :  { %922 = vmatpush1.bf16.msra.mxu1 %v3321_v19 }
  0x6d   :  { %923 = vmatprep.subr.bf16.mxu1 %v3328_v21 }
  0x70   :  { %924 = vmatpush1.bf16.msra.mxu1 %v3333_v23 }
  0x71   :  { %925 = vmatprep.subr.bf16.mxu1 %v3349_v28 }
  0x74   :  { %926 = vmatpush1.bf16.msra.mxu1 %v3354_v30 }
  0x75   :  { %927 = vmatprep.subr.bf16.mxu1 %v3359_v31 }
  0x78   :  { %928 = vmatpush1.bf16.msra.mxu1 %v3367_v33 }
  0x79   :  { %929 = vmatprep.subr.bf16.mxu1 %v3378_v36 }
  0x7c   :  { %930 = vmatpush1.bf16.msra.mxu1 %v3388_v37 }
  0x7d   :  { %931 = vmatprep.subr.bf16.mxu1 %v3394_v38 }
  0x80   :  { %932 = vmatpush1.bf16.msra.mxu1 %v3403_v40 }
  0x81   :  { %933 = vmatprep.subr.bf16.mxu1 %v3408_v41 }
  0x84   :  { %934 = vmatpush1.bf16.msra.mxu1 %v3418_v42 }
  0x85   :  { %935 = vmatprep.subr.bf16.mxu1 %v3424_v43 }
  0x88   :  { %936 = vmatpush1.bf16.msra.mxu1 %v3433_v44 }
  0x89   :  { %937 = vmatprep.subr.bf16.mxu1 %v3441_v45 }
  0x8c   :  { %938 = vmatpush1.bf16.msra.mxu1 %v3448_v46 }
  0x8d   :  { %939 = vmatprep.subr.bf16.mxu1 %v3455_v47 }
  0x90   :  { %940 = vmatpush1.bf16.msra.mxu1 %v3462_v48 }
  0x91   :  { %1401 = vmatprep.subr.bf16.mxu1 %v3245_v1 }
  0xfa   :  { %v153_v57 = vpop.f32.mrb[0].mxu0 }
  0xfb   :  { %v155_v58 = vpop.f32.mrb[1].mxu0 }
  0xfc   :  { %v157_v59 = vpop.f32.mrb[2].mxu0 }
  0xfd   :  { %v159_v60 = vpop.f32.mrb[3].mxu0 }
 0x102   :  { %v3537_v61 = vpop.f32.mrb[4].mxu0 }
 0x103   :  { %v3539_v62 = vpop.f32.mrb[5].mxu0 }
 0x104   :  { %v3541_v63 = vpop.f32.mrb[6].mxu0 }
 0x105   :  { %v3543_v0 = vpop.f32.mrb[7].mxu0 }
 0x10a   :  { %v3572_v26 = vpop.f32.mrb[8].mxu0 }
 0x10b   :  { %v3575_v27 = vpop.f32.mrb[9].mxu0 }
 0x10c   :  { %v3577_v29 = vpop.f32.mrb[10].mxu0 }
 0x10d   :  { %v3579_v32 = vpop.f32.mrb[11].mxu0 }
 0x112   :  { %v3592_v34 = vpop.f32.mrb[12].mxu0 }
 0x113   :  { %v3594_v35 = vpop.f32.mrb[13].mxu0 }
 0x114   :  { %v3596_v39 = vpop.f32.mrb[14].mxu0 }
 0x115   :  { %v3598_v49 = vpop.f32.mrb[15].mxu0 }
 0x126   :  { %v451_v1 = vpop.f32.mrb[0].mxu1 }
 0x127   :  { %v452_v12 = vadd.f32 %v451_v1, %v153_v57  ;;  %v453_v13 = vpop.f32.mrb[1].mxu1 }
 0x128   :  { %v454_v15 = vadd.f32 %v453_v13, %v155_v58  ;;  %v455_v16 = vpop.f32.mrb[2].mxu1 }
 0x129   :  { %3102 = vtanh.f32 %v452_v12  ;;  %v456_v18 = vpop.f32.mrb[3].mxu1 }
 0x12a   :  { %3104 = vtanh.f32 %v454_v15 }
 0x133   :  { %v3545_v20 = vpop.eup %3102 }
 0x134   :  { %v3547_v22 = vpop.eup %3104  ;;  %v464_v25 = vpack.c.bf16 %v3545_v20, %v3545_v20 }
 0x135   :  { %v465_v24 = vpack.c.bf16 %v3547_v22, %v3547_v22 }
 0x137   :  { %695 = vmatprep.mubr.bf16.mxu0 %v465_v24 }
 0x138   :  { %696 = vmatmul.mubr.bf16.vlgmr.msra.gmra.mrb[16].mxu0 %v464_v25 }
 0x139   :  { %1156 = vmatpush1.bf16.msra.mxu0 %v3250_v2 }
 0x13a   :  { %1157 = vmatprep.subr.bf16.mxu0 %v3256_v3 }
 0x13d   :  { %1158 = vmatpush1.bf16.msra.mxu0 %v3262_v4 }
 0x13e   :  { %1159 = vmatprep.subr.bf16.mxu0 %v3268_v5 }
 0x141   :  { %1160 = vmatpush1.bf16.msra.mxu0 %v3274_v6 }
 0x142   :  { %1161 = vmatprep.subr.bf16.mxu0 %v3280_v7 }
 0x145   :  { %1162 = vmatpush1.bf16.msra.mxu0 %v3286_v8 }
 0x146   :  { %1163 = vmatprep.subr.bf16.mxu0 %v3292_v9 }
 0x149   :  { %1164 = vmatpush1.bf16.msra.mxu0 %v3298_v10 }
 0x14a   :  { %1165 = vmatprep.subr.bf16.mxu0 %v3304_v11 }
 0x14d   :  { %1166 = vmatpush1.bf16.msra.mxu0 %v3310_v14 }
 0x14e   :  { %1167 = vmatprep.subr.bf16.mxu0 %v3316_v17 }
 0x151   :  { %1168 = vmatpush1.bf16.msra.mxu0 %v3321_v19 }
 0x152   :  { %1169 = vmatprep.subr.bf16.mxu0 %v3328_v21 }
 0x155   :  { %1170 = vmatpush1.bf16.msra.mxu0 %v3333_v23 }
 0x156   :  { %1171 = vmatprep.subr.bf16.mxu0 %v3349_v28 }
 0x159   :  { %1172 = vmatpush1.bf16.msra.mxu0 %v3354_v30 }
 0x15a   :  { %1173 = vmatprep.subr.bf16.mxu0 %v3359_v31 }
 0x15d   :  { %1174 = vmatpush1.bf16.msra.mxu0 %v3367_v33 }
 0x15e   :  { %1175 = vmatprep.subr.bf16.mxu0 %v3378_v36 }
 0x161   :  { %1176 = vmatpush1.bf16.msra.mxu0 %v3388_v37 }
 0x162   :  { %1177 = vmatprep.subr.bf16.mxu0 %v3394_v38 }
 0x165   :  { %1178 = vmatpush1.bf16.msra.mxu0 %v3403_v40 }
 0x166   :  { %1179 = vmatprep.subr.bf16.mxu0 %v3408_v41 }
 0x169   :  { %1180 = vmatpush1.bf16.msra.mxu0 %v3418_v42 }
 0x16a   :  { %1181 = vmatprep.subr.bf16.mxu0 %v3424_v43 }
 0x16d   :  { %1182 = vmatpush1.bf16.msra.mxu0 %v3433_v44 }
 0x16e   :  { %1183 = vmatprep.subr.bf16.mxu0 %v3441_v45 }
 0x171   :  { %1184 = vmatpush1.bf16.msra.mxu0 %v3448_v46 }
 0x172   :  { %1185 = vmatprep.subr.bf16.mxu0 %v3455_v47 }
 0x175   :  { %1186 = vmatpush1.bf16.msra.mxu0 %v3462_v48 }
 0x20b   :  { %v697_v50 = vpop.f32.mrb[16].mxu0 }
 0x20c   :  { %v698_v51 = vadd.f32 %v697_v50, %v157_v59  ;;  %v699_v52 = vpop.f32.mrb[17].mxu0  ;;  %v3778_v59 = vld [vmem:[%s4047_s2 + $0xa0] ss:$8 sps:$4 sm:$0xff]  }
 0x20d   :  { %v700_v53 = vadd.f32 %v699_v52, %v159_v60  ;;  %v701_v54 = vpop.f32.mrb[18].mxu0  ;;  %v3784_v60 = vld [vmem:[%s4047_s2 + $0xb4] ss:$8 sps:$4 sm:$0xff]   ;;  %v3073_v52 = vld [vmem:[%s4047_s2 + $0xd0] ss:$8 sps:$4 sm:$0xff]  }
 0x20e   :  { %3106 = vtanh.f32 %v698_v51  ;;  %v702_v55 = vpop.f32.mrb[19].mxu0  ;;  %v3078_v54 = vld [vmem:[%s4047_s2 + $0xe4] ss:$8 sps:$4 sm:$0xff]  }
 0x20f   :  { %3108 = vtanh.f32 %v700_v53  ;;  %v3075_v53 = vld [vmem:[%s4047_s2 + $0xd4] ss:$8 sps:$4 sm:$0xff]   ;;  %v3076_v55 = vld [vmem:[%s4047_s2 + $0xe0] ss:$8 sps:$4 sm:$0xff]  }
 0x218   :  { %v3600_v56 = vpop.eup %3106 }
 0x219   :  { %v3602_v57 = vpop.eup %3108  ;;  %v710_v1 = vpack.c.bf16 %v3600_v56, %v3600_v56 }
 0x21a   :  { %v711_v58 = vpack.c.bf16 %v3602_v57, %v3602_v57 }
 0x21c   :  { %941 = vmatprep.mubr.bf16.mxu1 %v711_v58  ;;  %v3081_v58 = vld [vmem:[%s4047_s2 + $0xf4] ss:$8 sps:$4 sm:$0xff]  }
 0x21d   :  { %942 = vmatmul.mubr.bf16.vlgmr.msra.gmra.mrb[4].mxu1 %v710_v1  ;;  %v3079_v1 = vld [vmem:[%s4047_s2 + $0xf0] ss:$8 sps:$4 sm:$0xff]  }
 0x21e   :  { %1402 = vmatpush1.bf16.msra.mxu1 %v3250_v2 }
 0x21f   :  { %1403 = vmatprep.subr.bf16.mxu1 %v3256_v3 }
 0x222   :  { %1404 = vmatpush1.bf16.msra.mxu1 %v3262_v4 }
 0x223   :  { %1405 = vmatprep.subr.bf16.mxu1 %v3268_v5 }
 0x226   :  { %1406 = vmatpush1.bf16.msra.mxu1 %v3274_v6 }
 0x227   :  { %1407 = vmatprep.subr.bf16.mxu1 %v3280_v7 }
 0x22a   :  { %1408 = vmatpush1.bf16.msra.mxu1 %v3286_v8 }
 0x22b   :  { %1409 = vmatprep.subr.bf16.mxu1 %v3292_v9 }
 0x22e   :  { %1410 = vmatpush1.bf16.msra.mxu1 %v3298_v10 }
 0x22f   :  { %1411 = vmatprep.subr.bf16.mxu1 %v3304_v11 }
 0x232   :  { %1412 = vmatpush1.bf16.msra.mxu1 %v3310_v14  ;;  %v3652_v14 = vld [vmem:[%s4047_s2] ss:$8 sps:$4 sm:$0xff]  }
 0x233   :  { %1413 = vmatprep.subr.bf16.mxu1 %v3316_v17  ;;  %v3657_v17 = vld [vmem:[%s4047_s2 + $0x4] ss:$8 sps:$4 sm:$0xff]  }
 0x234   :  { %1647 = vmatprep.subr.bf16.mxu0 %v3657_v17 }
 0x236   :  { %1414 = vmatpush1.bf16.msra.mxu1 %v3321_v19  ;;  %v3662_v19 = vld [vmem:[%s4047_s2 + $0x14] ss:$8 sps:$4 sm:$0xff]  }
 0x237   :  { %1415 = vmatprep.subr.bf16.mxu1 %v3328_v21  ;;  %v3670_v21 = vld [vmem:[%s4047_s2 + $0x10] ss:$8 sps:$4 sm:$0xff]  }
 0x23a   :  { %1416 = vmatpush1.bf16.msra.mxu1 %v3333_v23  ;;  %v3676_v23 = vld [vmem:[%s4047_s2 + $0x24] ss:$8 sps:$4 sm:$0xff]  }
 0x23b   :  { %1417 = vmatprep.subr.bf16.mxu1 %v3349_v28  ;;  %v3682_v28 = vld [vmem:[%s4047_s2 + $0x20] ss:$8 sps:$4 sm:$0xff]  }
 0x23e   :  { %1418 = vmatpush1.bf16.msra.mxu1 %v3354_v30  ;;  %v3688_v30 = vld [vmem:[%s4047_s2 + $0x34] ss:$8 sps:$4 sm:$0xff]  }
 0x23f   :  { %1419 = vmatprep.subr.bf16.mxu1 %v3359_v31  ;;  %v3694_v31 = vld [vmem:[%s4047_s2 + $0x30] ss:$8 sps:$4 sm:$0xff]  }
 0x242   :  { %1420 = vmatpush1.bf16.msra.mxu1 %v3367_v33  ;;  %v3700_v33 = vld [vmem:[%s4047_s2 + $0x44] ss:$8 sps:$4 sm:$0xff]  }
 0x243   :  { %1421 = vmatprep.subr.bf16.mxu1 %v3378_v36  ;;  %v3706_v36 = vld [vmem:[%s4047_s2 + $0x40] ss:$8 sps:$4 sm:$0xff]  }
 0x246   :  { %1422 = vmatpush1.bf16.msra.mxu1 %v3388_v37  ;;  %v3712_v37 = vld [vmem:[%s4047_s2 + $0x54] ss:$8 sps:$4 sm:$0xff]  }
 0x247   :  { %1423 = vmatprep.subr.bf16.mxu1 %v3394_v38  ;;  %v3718_v38 = vld [vmem:[%s4047_s2 + $0x50] ss:$8 sps:$4 sm:$0xff]  }
 0x24a   :  { %1424 = vmatpush1.bf16.msra.mxu1 %v3403_v40  ;;  %v3724_v40 = vld [vmem:[%s4047_s2 + $0x64] ss:$8 sps:$4 sm:$0xff]  }
 0x24b   :  { %1425 = vmatprep.subr.bf16.mxu1 %v3408_v41  ;;  %v3730_v41 = vld [vmem:[%s4047_s2 + $0x60] ss:$8 sps:$4 sm:$0xff]  }
 0x24e   :  { %1426 = vmatpush1.bf16.msra.mxu1 %v3418_v42  ;;  %v3736_v42 = vld [vmem:[%s4047_s2 + $0x74] ss:$8 sps:$4 sm:$0xff]  }
 0x24f   :  { %1427 = vmatprep.subr.bf16.mxu1 %v3424_v43  ;;  %v3742_v43 = vld [vmem:[%s4047_s2 + $0x70] ss:$8 sps:$4 sm:$0xff]  }
 0x252   :  { %1428 = vmatpush1.bf16.msra.mxu1 %v3433_v44  ;;  %v3748_v44 = vld [vmem:[%s4047_s2 + $0x84] ss:$8 sps:$4 sm:$0xff]  }
 0x253   :  { %1429 = vmatprep.subr.bf16.mxu1 %v3441_v45  ;;  %v3754_v45 = vld [vmem:[%s4047_s2 + $0x80] ss:$8 sps:$4 sm:$0xff]  }
 0x256   :  { %1430 = vmatpush1.bf16.msra.mxu1 %v3448_v46  ;;  %v3760_v46 = vld [vmem:[%s4047_s2 + $0x94] ss:$8 sps:$4 sm:$0xff]  }
 0x257   :  { %1431 = vmatprep.subr.bf16.mxu1 %v3455_v47  ;;  %v3766_v47 = vld [vmem:[%s4047_s2 + $0x90] ss:$8 sps:$4 sm:$0xff]  }
 0x25a   :  { %1432 = vmatpush1.bf16.msra.mxu1 %v3462_v48  ;;  %v3772_v48 = vld [vmem:[%s4047_s2 + $0xa4] ss:$8 sps:$4 sm:$0xff]  }
 0x25b   :  { %1893 = vmatprep.subr.bf16.mxu1 %v3657_v17 }
 0x2f0   :  { %v943_v2 = vpop.f32.mrb[4].mxu1 }
 0x2f1   :  { %v944_v3 = vadd.f32 %v943_v2, %v3537_v61  ;;  %v945_v4 = vpop.f32.mrb[5].mxu1  ;;  %v3790_v61 = vld [vmem:[%s4047_s2 + $0xb0] ss:$8 sps:$4 sm:$0xff]  }
 0x2f2   :  { %v946_v5 = vadd.f32 %v945_v4, %v3539_v62  ;;  %v947_v6 = vpop.f32.mrb[6].mxu1 }
 0x2f3   :  { %3110 = vtanh.f32 %v944_v3  ;;  %v948_v7 = vpop.f32.mrb[7].mxu1 }
 0x2f4   :  { %3112 = vtanh.f32 %v946_v5 }
 0x2fd   :  { %v3641_v8 = vpop.eup %3110 }
 0x2fe   :  { %v3643_v9 = vpop.eup %3112  ;;  %v956_v11 = vpack.c.bf16 %v3641_v8, %v3641_v8 }
 0x2ff   :  { %v957_v10 = vpack.c.bf16 %v3643_v9, %v3643_v9 }
 0x301   :  { %1187 = vmatprep.mubr.bf16.mxu0 %v957_v10 }
 0x302   :  { %1188 = vmatmul.mubr.bf16.vlgmr.msra.gmra.mrb[20].mxu0 %v956_v11 }
 0x303   :  { %1648 = vmatpush1.bf16.msra.mxu0 %v3652_v14 }
 0x304   :  { %1649 = vmatprep.subr.bf16.mxu0 %v3662_v19 }
 0x307   :  { %1650 = vmatpush1.bf16.msra.mxu0 %v3670_v21 }
 0x308   :  { %1651 = vmatprep.subr.bf16.mxu0 %v3676_v23 }
 0x30b   :  { %1652 = vmatpush1.bf16.msra.mxu0 %v3682_v28 }
 0x30c   :  { %1653 = vmatprep.subr.bf16.mxu0 %v3688_v30 }
 0x30f   :  { %1654 = vmatpush1.bf16.msra.mxu0 %v3694_v31 }
 0x310   :  { %1655 = vmatprep.subr.bf16.mxu0 %v3700_v33 }
 0x313   :  { %1656 = vmatpush1.bf16.msra.mxu0 %v3706_v36 }
 0x314   :  { %1657 = vmatprep.subr.bf16.mxu0 %v3712_v37 }
 0x317   :  { %1658 = vmatpush1.bf16.msra.mxu0 %v3718_v38 }
 0x318   :  { %1659 = vmatprep.subr.bf16.mxu0 %v3724_v40 }
 0x31b   :  { %1660 = vmatpush1.bf16.msra.mxu0 %v3730_v41 }
 0x31c   :  { %1661 = vmatprep.subr.bf16.mxu0 %v3736_v42 }
 0x31f   :  { %1662 = vmatpush1.bf16.msra.mxu0 %v3742_v43 }
 0x320   :  { %1663 = vmatprep.subr.bf16.mxu0 %v3748_v44 }
 0x323   :  { %1664 = vmatpush1.bf16.msra.mxu0 %v3754_v45 }
 0x324   :  { %1665 = vmatprep.subr.bf16.mxu0 %v3760_v46 }
 0x327   :  { %1666 = vmatpush1.bf16.msra.mxu0 %v3766_v47 }
 0x328   :  { %1667 = vmatprep.subr.bf16.mxu0 %v3772_v48 }
 0x32b   :  { %1668 = vmatpush1.bf16.msra.mxu0 %v3778_v59 }
 0x32c   :  { %1669 = vmatprep.subr.bf16.mxu0 %v3784_v60 }
 0x32f   :  { %1670 = vmatpush1.bf16.msra.mxu0 %v3790_v61 }
 0x3d5   :  { %v1189_v62 = vpop.f32.mrb[20].mxu0 }
 0x3d6   :  { %v1190_v12 = vadd.f32 %v1189_v62, %v3541_v63  ;;  %v1191_v13 = vpop.f32.mrb[21].mxu0  ;;  %v3072_v63 = vld [vmem:[%s4047_s2 + $0xc4] ss:$8 sps:$4 sm:$0xff]  }
 0x3d7   :  { %v1192_v15 = vadd.f32 %v1191_v13, %v3543_v0  ;;  %v1193_v16 = vpop.f32.mrb[22].mxu0  ;;  %v3070_v0 = vld [vmem:[%s4047_s2 + $0xc0] ss:$8 sps:$4 sm:$0xff]   ;;  %1671 = vmatprep.subr.bf16.mxu0 %v3072_v63 }
 0x3d8   :  { %3114 = vtanh.f32 %v1190_v12  ;;  %v1194_v18 = vpop.f32.mrb[23].mxu0  ;;  %1672 = vmatpush1.bf16.msra.mxu0 %v3070_v0  ;;  %v3098_v16 = vld [vmem:[%s4051_s6] sm:$0xff]  }
 0x3d9   :  { %3116 = vtanh.f32 %v1192_v15  ;;  %1673 = vmatprep.subr.bf16.mxu0 %v3075_v53 }
 0x3dc   :  { %1674 = vmatpush1.bf16.msra.mxu0 %v3073_v52 }
 0x3dd   :  { %1675 = vmatprep.subr.bf16.mxu0 %v3078_v54 }
 0x3e0   :  { %1676 = vmatpush1.bf16.msra.mxu0 %v3076_v55 }
 0x3e1   :  { %1677 = vmatprep.subr.bf16.mxu0 %v3081_v58 }
 0x3e2   :  { %v3796_v24 = vpop.eup %3114 }
 0x3e3   :  { %v3798_v25 = vpop.eup %3116  ;;  %v1202_v51 = vpack.c.bf16 %v3796_v24, %v3796_v24  ;;  %v2206_v12 = vpack.c.bf16 %v3796_v24, %v3641_v8 }
 0x3e4   :  { %v1203_v50 = vpack.c.bf16 %v3798_v25, %v3798_v25  ;;  %1678 = vmatpush1.bf16.msra.mxu0 %v3079_v1 }
 0x3e5   :  { %2139 = vmatprep.subr.bf16.mxu0 %v3657_v17 }
 0x3e6   :  { %1433 = vmatprep.mubr.bf16.mxu1 %v1203_v50 }
 0x3e7   :  { %1434 = vmatmul.mubr.bf16.vlgmr.msra.gmra.mrb[8].mxu1 %v1202_v51 }
 0x3e8   :  { %1894 = vmatpush1.bf16.msra.mxu1 %v3652_v14 }
 0x3e9   :  { %1895 = vmatprep.subr.bf16.mxu1 %v3662_v19 }
 0x3ec   :  { %1896 = vmatpush1.bf16.msra.mxu1 %v3670_v21 }
 0x3ed   :  { %1897 = vmatprep.subr.bf16.mxu1 %v3676_v23 }
 0x3f0   :  { %1898 = vmatpush1.bf16.msra.mxu1 %v3682_v28 }
 0x3f1   :  { %1899 = vmatprep.subr.bf16.mxu1 %v3688_v30 }
 0x3f4   :  { %1900 = vmatpush1.bf16.msra.mxu1 %v3694_v31 }
 0x3f5   :  { %1901 = vmatprep.subr.bf16.mxu1 %v3700_v33 }
 0x3f8   :  { %1902 = vmatpush1.bf16.msra.mxu1 %v3706_v36 }
 0x3f9   :  { %1903 = vmatprep.subr.bf16.mxu1 %v3712_v37 }
 0x3fc   :  { %1904 = vmatpush1.bf16.msra.mxu1 %v3718_v38 }
 0x3fd   :  { %1905 = vmatprep.subr.bf16.mxu1 %v3724_v40 }
 0x400   :  { %1906 = vmatpush1.bf16.msra.mxu1 %v3730_v41 }
 0x401   :  { %1907 = vmatprep.subr.bf16.mxu1 %v3736_v42 }
 0x404   :  { %1908 = vmatpush1.bf16.msra.mxu1 %v3742_v43 }
 0x405   :  { %1909 = vmatprep.subr.bf16.mxu1 %v3748_v44 }
 0x408   :  { %1910 = vmatpush1.bf16.msra.mxu1 %v3754_v45 }
 0x409   :  { %1911 = vmatprep.subr.bf16.mxu1 %v3760_v46 }
 0x40c   :  { %1912 = vmatpush1.bf16.msra.mxu1 %v3766_v47 }
 0x40d   :  { %1913 = vmatprep.subr.bf16.mxu1 %v3772_v48 }
 0x410   :  { %1914 = vmatpush1.bf16.msra.mxu1 %v3778_v59 }
 0x411   :  { %1915 = vmatprep.subr.bf16.mxu1 %v3784_v60 }
 0x414   :  { %1916 = vmatpush1.bf16.msra.mxu1 %v3790_v61 }
 0x415   :  { %1917 = vmatprep.subr.bf16.mxu1 %v3072_v63 }
 0x418   :  { %1918 = vmatpush1.bf16.msra.mxu1 %v3070_v0 }
 0x419   :  { %1919 = vmatprep.subr.bf16.mxu1 %v3075_v53 }
 0x41c   :  { %1920 = vmatpush1.bf16.msra.mxu1 %v3073_v52 }
 0x41d   :  { %1921 = vmatprep.subr.bf16.mxu1 %v3078_v54 }
 0x420   :  { %1922 = vmatpush1.bf16.msra.mxu1 %v3076_v55 }
 0x421   :  { %1923 = vmatprep.subr.bf16.mxu1 %v3081_v58 }
 0x424   :  { %1924 = vmatpush1.bf16.msra.mxu1 %v3079_v1 }
 0x4ba   :  { %v1435_v2 = vpop.f32.mrb[8].mxu1 }
 0x4bb   :  { %v1436_v3 = vadd.f32 %v1435_v2, %v3572_v26  ;;  %v1437_v4 = vpop.f32.mrb[9].mxu1  ;;  %v3082_v26 = vld [vmem:[%s4049_s4 + $0x40] sm:$0xff]  }
 0x4bc   :  { %v1438_v5 = vadd.f32 %v1437_v4, %v3575_v27  ;;  %v1439_v6 = vpop.f32.mrb[10].mxu1  ;;  %2905 = vmatprep.subr.bf16.mxu1 %v3082_v26 }
 0x4bd   :  { %3118 = vtanh.f32 %v1436_v3  ;;  %v1440_v7 = vpop.f32.mrb[11].mxu1 }
 0x4be   :  { %3120 = vtanh.f32 %v1438_v5 }
 0x4c7   :  { %v3854_v10 = vpop.eup %3118 }
 0x4c8   :  { %v3856_v11 = vpop.eup %3120  ;;  %v1448_v17 = vpack.c.bf16 %v3854_v10, %v3854_v10 }
 0x4c9   :  { %v1449_v62 = vpack.c.bf16 %v3856_v11, %v3856_v11 }
 0x4cb   :  { %1679 = vmatprep.mubr.bf16.mxu0 %v1449_v62 }
 0x4cc   :  { %1680 = vmatmul.mubr.bf16.vlgmr.msra.gmra.mrb[24].mxu0 %v1448_v17 }
 0x4cd   :  { %2140 = vmatpush1.bf16.msra.mxu0 %v3652_v14 }
 0x4ce   :  { %2141 = vmatprep.subr.bf16.mxu0 %v3662_v19 }
 0x4d1   :  { %2142 = vmatpush1.bf16.msra.mxu0 %v3670_v21 }
 0x4d2   :  { %2143 = vmatprep.subr.bf16.mxu0 %v3676_v23 }
 0x4d5   :  { %2144 = vmatpush1.bf16.msra.mxu0 %v3682_v28 }
 0x4d6   :  { %2145 = vmatprep.subr.bf16.mxu0 %v3688_v30 }
 0x4d9   :  { %2146 = vmatpush1.bf16.msra.mxu0 %v3694_v31 }
 0x4da   :  { %2147 = vmatprep.subr.bf16.mxu0 %v3700_v33 }
 0x4dd   :  { %2148 = vmatpush1.bf16.msra.mxu0 %v3706_v36  ;;  %v3083_v36 = vld [vmem:[%s4049_s4] sm:$0xff]  }
 0x4de   :  { %2149 = vmatprep.subr.bf16.mxu0 %v3712_v37 }
 0x4e1   :  { %2150 = vmatpush1.bf16.msra.mxu0 %v3718_v38  ;;  %v3084_v38 = vld [vmem:[%s4049_s4 + $0x48] sm:$0xff]  }
 0x4e2   :  { %2151 = vmatprep.subr.bf16.mxu0 %v3724_v40  ;;  %v3086_v40 = vld [vmem:[%s4049_s4 + $0x50] sm:$0xff]  }
 0x4e5   :  { %2152 = vmatpush1.bf16.msra.mxu0 %v3730_v41  ;;  %v3087_v41 = vld [vmem:[%s4049_s4 + $0x10] sm:$0xff]  }
 0x4e6   :  { %2153 = vmatprep.subr.bf16.mxu0 %v3736_v42  ;;  %v3090_v42 = vld [vmem:[%s4049_s4 + $0x60] sm:$0xff]  }
 0x4e9   :  { %2154 = vmatpush1.bf16.msra.mxu0 %v3742_v43  ;;  %v3091_v43 = vld [vmem:[%s4049_s4 + $0x20] sm:$0xff]  }
 0x4ea   :  { %2155 = vmatprep.subr.bf16.mxu0 %v3748_v44  ;;  %v3092_v44 = vld [vmem:[%s4049_s4 + $0x68] sm:$0xff]  }
 0x4ed   :  { %2156 = vmatpush1.bf16.msra.mxu0 %v3754_v45  ;;  %v3093_v45 = vld [vmem:[%s4049_s4 + $0x28] sm:$0xff]  }
 0x4ee   :  { %2157 = vmatprep.subr.bf16.mxu0 %v3760_v46  ;;  %v3094_v46 = vld [vmem:[%s4049_s4 + $0x70] sm:$0xff]  }
 0x4f1   :  { %2158 = vmatpush1.bf16.msra.mxu0 %v3766_v47  ;;  %v3095_v47 = vld [vmem:[%s4049_s4 + $0x30] sm:$0xff]  }
 0x4f2   :  { %2159 = vmatprep.subr.bf16.mxu0 %v3772_v48  ;;  %v3096_v48 = vld [vmem:[%s4049_s4 + $0x78] sm:$0xff]  }
 0x4f5   :  { %2160 = vmatpush1.bf16.msra.mxu0 %v3778_v59  ;;  %v3097_v59 = vld [vmem:[%s4049_s4 + $0x38] sm:$0xff]  }
 0x4f6   :  { %2161 = vmatprep.subr.bf16.mxu0 %v3784_v60  ;;  %v2204_v60 = vpack.c.bf16 %v3600_v56, %v3545_v20 }
 0x4f9   :  { %2162 = vmatpush1.bf16.msra.mxu0 %v3790_v61  ;;  %v2207_v61 = vpack.c.bf16 %v3798_v25, %v3643_v9 }
 0x4fa   :  { %2163 = vmatprep.subr.bf16.mxu0 %v3072_v63 }
 0x4fd   :  { %2164 = vmatpush1.bf16.msra.mxu0 %v3070_v0  ;;  %v3101_v0 = vld [vmem:[%s4051_s6 + $0x18] sm:$0xff]  }
 0x4fe   :  { %2165 = vmatprep.subr.bf16.mxu0 %v3075_v53  ;;  %v3970_v53 = vld [vmem:[%s4050_s5] ss:$0 sm:$0xff] }
 0x501   :  { %2166 = vmatpush1.bf16.msra.mxu0 %v3073_v52 }
 0x502   :  { %2167 = vmatprep.subr.bf16.mxu0 %v3078_v54 }
 0x505   :  { %2168 = vmatpush1.bf16.msra.mxu0 %v3076_v55 }
 0x506   :  { %2169 = vmatprep.subr.bf16.mxu0 %v3081_v58 }
 0x509   :  { %2170 = vmatpush1.bf16.msra.mxu0 %v3079_v1 }
 0x50a   :  { %2953 = vmatprep.subr.bf16.mxu0 %v3098_v16 }
 0x59f   :  { %v1681_v27 = vpop.f32.mrb[24].mxu0 }
 0x5a0   :  { %v1682_v14 = vadd.f32 %v1681_v27, %v3577_v29  ;;  %v1683_v19 = vpop.f32.mrb[25].mxu0  ;;  %v2205_v29 = vpack.c.bf16 %v3602_v57, %v3547_v22  ;;  %v3088_v22 = vld [vmem:[%s4049_s4 + $0x58] sm:$0xff]  }
 0x5a1   :  { %v1684_v21 = vadd.f32 %v1683_v19, %v3579_v32  ;;  %v1685_v23 = vpop.f32.mrb[26].mxu0  ;;  %v3085_v32 = vld [vmem:[%s4049_s4 + $0x8] sm:$0xff]   ;;  %v3089_v57 = vld [vmem:[%s4049_s4 + $0x18] sm:$0xff]  }
 0x5a2   :  { %3122 = vtanh.f32 %v1682_v14  ;;  %v1686_v28 = vpop.f32.mrb[27].mxu0 }
 0x5a3   :  { %3124 = vtanh.f32 %v1684_v21 }
 0x5ac   :  { %v3123_v30 = vpop.eup %3122 }
 0x5ad   :  { %v3125_v31 = vpop.eup %3124  ;;  %v1694_v37 = vpack.c.bf16 %v3123_v30, %v3123_v30  ;;  %v2208_v15 = vpack.c.bf16 %v3123_v30, %v3854_v10 }
 0x5ae   :  { %v1695_v33 = vpack.c.bf16 %v3125_v31, %v3125_v31  ;;  %v2209_v13 = vpack.c.bf16 %v3125_v31, %v3856_v11 }
 0x5b0   :  { %1925 = vmatprep.mubr.bf16.mxu1 %v1695_v33 }
 0x5b1   :  { %1926 = vmatmul.mubr.bf16.vlgmr.msra.gmra.mrb[12].mxu1 %v1694_v37 }
 0x5b2   :  { %2906 = vmatpush3.bf16.msra.mxu1 %v3083_v36  ;;  %2379 = vmatprep.mubr.bf16.mxu1 %v2205_v29 }
 0x5b3   :  { %2907 = vmatprep.subr.bf16.mxu1 %v3084_v38 }
 0x5b6   :  { %2908 = vmatpush3.bf16.msra.mxu1 %v3085_v32 }
 0x5b7   :  { %2909 = vmatprep.subr.bf16.mxu1 %v3086_v40 }
 0x5ba   :  { %2910 = vmatpush3.bf16.msra.mxu1 %v3087_v41 }
 0x5bb   :  { %2911 = vmatprep.subr.bf16.mxu1 %v3088_v22 }
 0x5be   :  { %2912 = vmatpush3.bf16.msra.mxu1 %v3089_v57 }
 0x5bf   :  { %2913 = vmatprep.subr.bf16.mxu1 %v3090_v42 }
 0x5c2   :  { %2914 = vmatpush3.bf16.msra.mxu1 %v3091_v43 }
 0x5c3   :  { %2915 = vmatprep.subr.bf16.mxu1 %v3092_v44 }
 0x5c6   :  { %2916 = vmatpush3.bf16.msra.mxu1 %v3093_v45 }
 0x5c7   :  { %2917 = vmatprep.subr.bf16.mxu1 %v3094_v46 }
 0x5ca   :  { %2918 = vmatpush3.bf16.msra.mxu1 %v3095_v47 }
 0x5cb   :  { %2919 = vmatprep.subr.bf16.mxu1 %v3096_v48 }
 0x5ce   :  { %2920 = vmatpush3.bf16.msra.mxu1 %v3097_v59 }
 0x5d1   :  { %2380 = vmatmul.mubr.bf16.vlgmr.msra.gmra.mrb[16].mxu1 %v2204_v60 }
 0x5d2   :  { %2387 = vmatprep.mubr.bf16.mxu1 %v2207_v61 }
 0x5d9   :  { %2388 = vmatmul.mubr.bf16.gmra.mrb[20].mxu1 %v2206_v12 }
 0x5da   :  { %2395 = vmatprep.mubr.bf16.mxu1 %v2209_v13 }
 0x5e1   :  { %2396 = vmatmul.mubr.bf16.gmra.mrb[24].mxu1 %v2208_v15 }
 0x684   :  { %v1927_v20 = vpop.f32.mrb[12].mxu1 }
 0x685   :  { %v1928_v56 = vadd.f32 %v1927_v20, %v3592_v34  ;;  %v1929_v9 = vpop.f32.mrb[13].mxu1  ;;  %v3099_v34 = vld [vmem:[%s4051_s6 + $0x8] sm:$0xff]  }
 0x686   :  { %v1930_v18 = vadd.f32 %v1929_v9, %v3594_v35  ;;  %v1931_v25 = vpop.f32.mrb[14].mxu1  ;;  %v3100_v35 = vld [vmem:[%s4051_s6 + $0x10] sm:$0xff]  }
 0x687   :  { %3126 = vtanh.f32 %v1928_v56  ;;  %v1932_v8 = vpop.f32.mrb[15].mxu1 }
 0x688   :  { %3128 = vtanh.f32 %v1930_v18 }
 0x691   :  { %v3950_v24 = vpop.eup %3126 }
 0x692   :  { %v3952_v50 = vpop.eup %3128  ;;  %v1940_v63 = vpack.c.bf16 %v3950_v24, %v3950_v24 }
 0x693   :  { %v1941_v51 = vpack.c.bf16 %v3952_v50, %v3952_v50 }
 0x695   :  { %2171 = vmatprep.mubr.bf16.mxu0 %v1941_v51 }
 0x696   :  { %2172 = vmatmul.mubr.bf16.vlgmr.msra.gmra.mrb[28].mxu0 %v1940_v63 }
 0x697   :  { %2954 = vmatpush3.bf16.msra.mxu0 %v3098_v16 }
 0x698   :  { %2955 = vmatprep.subr.bf16.mxu0 %v3099_v34 }
 0x69b   :  { %2956 = vmatpush3.bf16.msra.mxu0 %v3099_v34 }
 0x69c   :  { %2957 = vmatprep.subr.bf16.mxu0 %v3100_v35 }
 0x69f   :  { %2958 = vmatpush3.bf16.msra.mxu0 %v3100_v35 }
 0x6a0   :  { %2959 = vmatprep.subr.bf16.mxu0 %v3101_v0 }
 0x6a3   :  { %2960 = vmatpush3.bf16.msra.mxu0 %v3101_v0 }
 0x6a4   :  { %v2921_v52 = vpop.f32.mrb[16].mxu1 }
 0x6a5   :  { %v2922_v54 = vpop.f32.mrb[17].mxu1 }
 0x6a6   :  { %v2923_v55 = vadd.f32 %v2922_v54, %v2921_v52  ;;  %v2924_v58 = vpop.f32.mrb[18].mxu1 }
 0x6a7   :  { %v2925_v1 = vpop.f32.mrb[19].mxu1 }
 0x6a8   :  { %v2382_v2 = vadd.f32 %v2923_v55, %v3970_v53  ;;  %v2926_v3 = vadd.f32 %v2925_v1, %v2924_v58 }
 0x6aa   :  { %v2385_v4 = vadd.f32 %v2926_v3, %v3970_v53  ;;  %3130 = vtanh.f32 %v2382_v2 }
 0x6ac   :  { %3132 = vtanh.f32 %v2385_v4  ;;  %v2927_v5 = vpop.f32.mrb[20].mxu1 }
 0x6ad   :  { %v2928_v6 = vpop.f32.mrb[21].mxu1 }
 0x6ae   :  { %v2929_v7 = vadd.f32 %v2928_v6, %v2927_v5  ;;  %v2930_v10 = vpop.f32.mrb[22].mxu1 }
 0x6af   :  { %v2931_v11 = vpop.f32.mrb[23].mxu1 }
 0x6b0   :  { %v2390_v62 = vadd.f32 %v2929_v7, %v3970_v53  ;;  %v2932_v17 = vadd.f32 %v2931_v11, %v2930_v10 }
 0x6b2   :  { %v2393_v26 = vadd.f32 %v2932_v17, %v3970_v53  ;;  %3134 = vtanh.f32 %v2390_v62 }
 0x6b4   :  { %3136 = vtanh.f32 %v2393_v26  ;;  %v2933_v27 = vpop.f32.mrb[24].mxu1  ;;  %v3131_v14 = vpop.eup %3130 }
 0x6b5   :  { %v2934_v19 = vpop.f32.mrb[25].mxu1 }
 0x6b6   :  { %v3133_v21 = vpop.eup %3132  ;;  %v2935_v23 = vadd.f32 %v2934_v19, %v2933_v27  ;;  %v2936_v28 = vpop.f32.mrb[26].mxu1 }
 0x6b7   :  { %v2937_v30 = vpop.f32.mrb[27].mxu1  ;;  %v2420_v31 = vpack.c.bf16 %v3133_v21, %v3131_v14 }
 0x6b8   :  { %v2398_v33 = vadd.f32 %v2935_v23, %v3970_v53  ;;  %v2938_v36 = vadd.f32 %v2937_v30, %v2936_v28 }
 0x6b9   :  { %2961 = vmatprep.mubr.msk.bf16.mxu0 %vm106_vm0, %v2420_v31 }
 0x6ba   :  { %v2401_v37 = vadd.f32 %v2938_v36, %v3970_v53  ;;  %3138 = vtanh.f32 %v2398_v33 }
 0x6bc   :  { %3140 = vtanh.f32 %v2401_v37  ;;  %v3135_v38 = vpop.eup %3134 }
 0x6be   :  { %v3137_v29 = vpop.eup %3136 }
 0x6bf   :  { %v2421_v32 = vpack.c.bf16 %v3137_v29, %v3135_v38 }
 0x6c1   :  { %2962 = vmatmul.mubr.msk.bf16.vlgmr.msra.gmra.mrb[32].mxu0 %vm106_vm0, %v2421_v32 }
 0x6c4   :  { %v3980_v40 = vpop.eup %3138 }
 0x6c6   :  { %v3982_v41 = vpop.eup %3140 }
 0x6c7   :  { %v2422_v22 = vpack.c.bf16 %v3982_v41, %v3980_v40 }
 0x6c9   :  { %2965 = vmatprep.mubr.msk.bf16.mxu0 %vm106_vm0, %v2422_v22 }
 0x769   :  { %v2173_v57 = vpop.f32.mrb[28].mxu0 }
 0x76a   :  { %v2174_v42 = vadd.f32 %v2173_v57, %v3596_v39  ;;  %v2175_v43 = vpop.f32.mrb[29].mxu0 }
 0x76b   :  { %v2176_v44 = vadd.f32 %v2175_v43, %v3598_v49  ;;  %v2177_v45 = vpop.f32.mrb[30].mxu0  ;;  %v2896_v49 = vld [vmem:[%s4052_s7] ss:$0 sm:$0xff] }
 0x76c   :  { %3142 = vtanh.f32 %v2174_v42  ;;  %v2178_v46 = vpop.f32.mrb[31].mxu0 }
 0x76d   :  { %3144 = vtanh.f32 %v2176_v44 }
 0x776   :  { %v3143_v47 = vpop.eup %3142 }
 0x777   :  { %v3145_v48 = vpop.eup %3144  ;;  %2186 = vst [vmem:[%s4054_s9] sm:$0xff] %v3143_v47  ;;  %v2210_v39 = vpack.c.bf16 %v3143_v47, %v3950_v24 }
 0x778   :  { %2187 = vst [vmem:[%s4054_s9 + $0x8] sm:$0xff] %v3145_v48  ;;  %v2211_v59 = vpack.c.bf16 %v3145_v48, %v3952_v50 }
 0x77a   :  { %2403 = vmatprep.mubr.bf16.mxu1 %v2211_v59 }
 0x77b   :  { %2404 = vmatmul.mubr.bf16.gmra.mrb[28].mxu1 %v2210_v39 }
 0x794   :  { %v2963_v60 = vpop.f32.mrb[32].mxu0 }
 0x795   :  { %v2518_v61 = vadd.f32 %v2963_v60, %v2896_v49  ;;  %v2509_v12 = vpop.f32.mrb[33].mxu0 }
 0x796   :  { %v2510_v13 = vadd.f32 %v2896_v49, %v2509_v12  ;;  %v2964_v15 = vpop.f32.mrb[34].mxu0 }
 0x797   :  { %2552 = vrot.lane.b32.xlu1 %v2518_v61, %s3178_s28  ;;  %v2512_v16 = vpop.f32.mrb[35].mxu0  ;;  %v2521_v20 = vadd.f32 %v2964_v15, %v2896_v49 }
 0x798   :  { %2548 = vrot.lane.b32.xlu0 %v2510_v13, %s3178_s28  ;;  %v2513_v56 = vadd.f32 %v2896_v49, %v2512_v16 }
 0x79b   :  { %2554 = vrot.lane.b32.xlu1 %v2521_v20, %s3178_s28 }
 0x79c   :  { %2550 = vrot.lane.b32.xlu0 %v2513_v56, %s3178_s28 }
 0x809   :  { %v2553_v9 = vpop.permute.xlu1 %2552 }
 0x80a   :  { %v2574_v18 = vsel %vm106_vm0, %v3135_v38, %v2553_v9  ;;  %v2549_v25 = vpop.permute.xlu0 %2548 }
 0x80b   :  { %2582 = vst [vmem:[%s4053_s8 + $0x10] sm:$0xff] %v2574_v18  ;;  %v2572_v8 = vsel %vm106_vm0, %v3131_v14, %v2549_v25 }
 0x80c   :  { %2580 = vst [vmem:[%s4053_s8] sm:$0xff] %v2572_v8 }
 0x80d   :  { %v2555_v24 = vpop.permute.xlu1 %2554 }
 0x80e   :  { %v2575_v50 = vsel %vm106_vm0, %v3137_v29, %v2555_v24  ;;  %v2551_v51 = vpop.permute.xlu0 %2550 }
 0x80f   :  { %2583 = vst [vmem:[%s4053_s8 + $0x18] sm:$0xff] %v2575_v50  ;;  %v2573_v63 = vsel %vm106_vm0, %v3133_v21, %v2551_v51 }
 0x810   :  { %2581 = vst [vmem:[%s4053_s8 + $0x8] sm:$0xff] %v2573_v63 }
 0x84e   :  { %v2939_v34 = vpop.f32.mrb[28].mxu1 }
 0x84f   :  { %v2940_v35 = vpop.f32.mrb[29].mxu1 }
 0x850   :  { %v2941_v0 = vadd.f32 %v2940_v35, %v2939_v34  ;;  %v2942_v52 = vpop.f32.mrb[30].mxu1 }
 0x851   :  { %v2943_v54 = vpop.f32.mrb[31].mxu1 }
 0x852   :  { %v2406_v55 = vadd.f32 %v2941_v0, %v3970_v53  ;;  %v2944_v58 = vadd.f32 %v2943_v54, %v2942_v52 }
 0x854   :  { %v2409_v1 = vadd.f32 %v2944_v58, %v3970_v53  ;;  %3146 = vtanh.f32 %v2406_v55 }
 0x856   :  { %3148 = vtanh.f32 %v2409_v1 }
 0x85e   :  { %v3147_v2 = vpop.eup %3146 }
 0x860   :  { %v3149_v3 = vpop.eup %3148 }
 0x861   :  { %v2423_v4 = vpack.c.bf16 %v3149_v3, %v3147_v2 }
 0x863   :  { %2966 = vmatmul.mubr.msk.bf16.gmra.mrb[36].mxu0 %vm106_vm0, %v2423_v4 }
 0x936   :  { %v2967_v5 = vpop.f32.mrb[36].mxu0 }
 0x937   :  { %v2525_v6 = vpop.f32.mrb[37].mxu0  ;;  %v2534_v17 = vadd.f32 %v2967_v5, %v2896_v49 }
 0x938   :  { %v2526_v7 = vadd.f32 %v2896_v49, %v2525_v6  ;;  %v2968_v10 = vpop.f32.mrb[38].mxu0 }
 0x939   :  { %v2528_v11 = vpop.f32.mrb[39].mxu0  ;;  %v2537_v26 = vadd.f32 %v2968_v10, %v2896_v49 }
 0x93a   :  { %v2529_v62 = vadd.f32 %v2896_v49, %v2528_v11  ;;  %2556 = vrot.lane.b32.xlu0 %v2526_v7, %s3178_s28 }
 0x93c   :  { %2558 = vrot.lane.b32.xlu1 %v2529_v62, %s3178_s28 }
 0x93e   :  { %2560 = vrot.lane.b32.xlu0 %v2534_v17, %s3178_s28 }
 0x940   :  { %2562 = vrot.lane.b32.xlu1 %v2537_v26, %s3178_s28 }
 0x9ac   :  { %v2557_v53 = vpop.permute.xlu0 %2556 }
 0x9ad   :  { %v2576_v27 = vsel %vm106_vm0, %v3980_v40, %v2557_v53 }
 0x9ae   :  { %2584 = vst [vmem:[%s4053_s8 + $0x20] sm:$0xff] %v2576_v27  ;;  %v2559_v14 = vpop.permute.xlu1 %2558 }
 0x9af   :  { %v2577_v19 = vsel %vm106_vm0, %v3982_v41, %v2559_v14 }
 0x9b0   :  { %2585 = vst [vmem:[%s4053_s8 + $0x28] sm:$0xff] %v2577_v19  ;;  %v2561_v21 = vpop.permute.xlu0 %2560 }
 0x9b1   :  { %v2578_v23 = vsel %vm106_vm0, %v3147_v2, %v2561_v21 }
 0x9b2   :  { %2586 = vst [vmem:[%s4053_s8 + $0x30] sm:$0xff] %v2578_v23  ;;  %v2563_v28 = vpop.permute.xlu1 %2562 }
 0x9b3   :  { %v2579_v30 = vsel %vm106_vm0, %v3149_v3, %v2563_v28 }
 0x9b4   :  { %2587 = vst [vmem:[%s4053_s8 + $0x38] sm:$0xff] %v2579_v30 }
 0x9b5   :  { %2596 = vsyncpa [#allocation5], 1 }

</bundles_post_ra>
